<compile_context>
chip_gen: v6e
topology: v6e:2x2x1
jax: 0.10.0
libtpu: 0.0.40
codegen_flags: <defaults>
</compile_context>

<pallas_src>
import jax
import jax.numpy as jnp
from jax.experimental import pallas as pl
from jax.experimental.pallas import tpu as pltpu


_TINY_MACS = 1 << 21       # below this, one fused XLA op beats a kernel launch
_WRES_MAX_DIM_IN = 1024    # weight-resident (single-K-tile) path threshold


# ---------------------------------------------------------------------------
# Kernels
# ---------------------------------------------------------------------------
def _wres_kernel(x_ref, w_ref, gf_ref, o_ref):
    # x_ref : (1, tS, dim_in)   w_ref : (dim_in, tN)  (bf16 by default)
    # gf_ref: (1, 2, tN) f32    o_ref : (1, tS, tN)
    x = x_ref[0].astype(w_ref.dtype)                       # feed the MXU bf16
    acc = jnp.dot(x, w_ref[...], preferred_element_type=jnp.float32)
    gf = gf_ref[0]                                         # (2, tN) f32
    o_ref[0] = (acc * gf[0:1, :] + gf[1:2, :]).astype(o_ref.dtype)


def _ktiled_kernel(x_ref, w_ref, gf_ref, o_ref, acc_ref):
    # x_ref : (1, tS, tK)   w_ref : (tK, tN)   gf_ref : (1, 2, tN) f32
    # o_ref : (1, tS, tN)   acc_ref: (tS, tN) f32 scratch (lives across K)
    k = pl.program_id(3)
    x = x_ref[0].astype(w_ref.dtype)
    part = jnp.dot(x, w_ref[...], preferred_element_type=jnp.float32)

    @pl.when(k == 0)
    def _():
        acc_ref[...] = part                                # write, no zero pass

    @pl.when(k != 0)
    def _():
        acc_ref[...] += part

    @pl.when(k == pl.num_programs(3) - 1)
    def _():
        gf = gf_ref[0]                                     # (2, tN) f32
        o_ref[0] = (acc_ref[...] * gf[0:1, :] + gf[1:2, :]).astype(o_ref.dtype)


# ---------------------------------------------------------------------------
# Tiling helpers
# ---------------------------------------------------------------------------
def _pick_tile(dim, preferred, minimum):
    """Full extent if it fits `preferred`; else the largest power-of-two tile in
    [minimum, preferred] dividing `dim`; else `preferred` (caller uses a pl.cdiv
    grid / zero-padding for the remainder).  Never returns a sub-`minimum`
    tile, so the MXU feed and stores stay dense."""
    if dim <= preferred:
        return dim
    t = preferred
    while t >= minimum:
        if dim % t == 0:
            return t
        t //= 2
    return preferred


# ---------------------------------------------------------------------------
# Wrapper
# ---------------------------------------------------------------------------
def concat_scale_linear(context, x, w, b, gw, gb, bw, *, mxu_dtype=jnp.bfloat16):
    """Forward pass of ConcatScaleLinear.

    context : (B, 1+dim_c)
    x       : (B, S, dim_in) or (B, dim_in)
    w       : (dim_in, dim_out)   _layer weight, pre-transposed (in x out)
    b       : (dim_out,)          _layer bias
    gw      : (1+dim_c, dim_out)  _hyper_gate weight, pre-transposed
    gb      : (dim_out,)          _hyper_gate bias
    bw      : (1+dim_c, dim_out)  _hyper_bias weight, pre-transposed (no bias)
    mxu_dtype : dtype fed to the MXU (default bf16; None -> keep x dtype, exact)
    Returns (B, S, dim_out) (or (B, dim_out) for 2-D x), in x.dtype.
    """
    squeeze_seq = (x.ndim == 2)
    if squeeze_seq:
        x = x[:, None, :]
    B, S, dim_in = x.shape
    dim_out = w.shape[1]
    out_dtype = x.dtype

    # ---- hoisted tiny context matmuls + exact bias fold ----------------------
    ctx32 = context.astype(jnp.float32)
    gate = ctx32 @ gw.astype(jnp.float32) + gb.astype(jnp.float32)   # (B, dim_out)
    hbias = ctx32 @ bw.astype(jnp.float32)                           # (B, dim_out)
    fused_bias = b.astype(jnp.float32)[None, :] * gate + hbias       # b*gate + hb

    # ---- tiny-problem bypass: launch + masked-store overhead would dominate --
    if B * S * dim_in * dim_out < _TINY_MACS:
        out = (x.astype(jnp.float32) @ w.astype(jnp.float32)
               * gate[:, None, :] + fused_bias[:, None, :]).astype(out_dtype)
        return out[:, 0, :] if squeeze_seq else out

    mdt = out_dtype if mxu_dtype is None else jnp.dtype(mxu_dtype)
    w_k = w.astype(mdt)                          # cast once; halves W HBM bytes
    gf = jnp.stack([gate, fused_bias], axis=1)   # (B, 2, dim_out) f32, one block

    # ---- tile selection (lane-dense, never below 256) -------------------------
    tS = _pick_tile(S, 512, 256)
    tN = _pick_tile(dim_out, 512, 256)
    nS = pl.cdiv(S, tS)
    nN = pl.cdiv(dim_out, tN)

    x_bytes = x.size * x.dtype.itemsize
    w_bytes = w_k.size * w_k.dtype.itemsize
    out_bytes = B * S * dim_out * jnp.dtype(out_dtype).itemsize
    gf_bytes = gf.size * 4
    flops = 2 * B * S * dim_in * dim_out

    if dim_in <= _WRES_MAX_DIM_IN:
        # ---- weight-resident path: no K axis, grid (B, N, S), S innermost ----
        grid = (B, nN, nS)
        out = pl.pallas_call(
            _wres_kernel,
            out_shape=jax.ShapeDtypeStruct((B, S, dim_out), out_dtype),
            grid_spec=pltpu.PrefetchScalarGridSpec(
                num_scalar_prefetch=0,
                grid=grid,
                in_specs=[
                    pl.BlockSpec((1, tS, dim_in), lambda bi, ni, si: (bi, si, 0)),
                    pl.BlockSpec((dim_in, tN), lambda bi, ni, si: (0, ni)),
                    pl.BlockSpec((1, 2, tN), lambda bi, ni, si: (bi, 0, ni)),
                ],
                out_specs=pl.BlockSpec((1, tS, tN),
                                       lambda bi, ni, si: (bi, si, ni)),
            ),
            compiler_params=pltpu.CompilerParams(
                dimension_semantics=("parallel", "parallel", "parallel")),
            cost_estimate=pl.CostEstimate(
                flops=int(flops), transcendentals=0,
                bytes_accessed=int(nN * x_bytes + B * w_bytes
                                   + out_bytes + gf_bytes)),
        )(x, w_k, gf)
    else:
        # ---- K-tiled path: f32 accumulator across the innermost K axis -------
        tK = _pick_tile(dim_in, 512, 256)
        if dim_in % tK:
            # Zero-pad the contraction dim: a partial K block would otherwise
            # feed stale VMEM into the reduction.
            k_pad = pl.cdiv(dim_in, tK) * tK
            x = jnp.pad(x, ((0, 0), (0, 0), (0, k_pad - dim_in)))
            w_k = jnp.pad(w_k, ((0, k_pad - dim_in), (0, 0)))
        nK = x.shape[-1] // tK
        grid = (B, nS, nN, nK)
        out = pl.pallas_call(
            _ktiled_kernel,
            out_shape=jax.ShapeDtypeStruct((B, S, dim_out), out_dtype),
            grid_spec=pltpu.PrefetchScalarGridSpec(
                num_scalar_prefetch=0,
                grid=grid,
                in_specs=[
                    pl.BlockSpec((1, tS, tK), lambda bi, si, ni, ki: (bi, si, ki)),
                    pl.BlockSpec((tK, tN), lambda bi, si, ni, ki: (ki, ni)),
                    pl.BlockSpec((1, 2, tN), lambda bi, si, ni, ki: (bi, 0, ni)),
                ],
                out_specs=pl.BlockSpec((1, tS, tN),
                                       lambda bi, si, ni, ki: (bi, si, ni)),
                scratch_shapes=[pltpu.VMEM((tS, tN), jnp.float32)],
            ),
            compiler_params=pltpu.CompilerParams(
                dimension_semantics=("parallel", "parallel", "parallel",
                                     "arbitrary")),
            cost_estimate=pl.CostEstimate(
                flops=int(flops), transcendentals=0,
                bytes_accessed=int(nN * x_bytes + B * nS * w_bytes
                                   + out_bytes + gf_bytes)),
        )(x, w_k, gf)

    return out[:, 0, :] if squeeze_seq else out


# ---------------------------------------------------------------------------
# Reference + tests
# ---------------------------------------------------------------------------
def _reference(context, x, w, b, gw, gb, bw):
    gate = context @ gw + gb
    hb = context @ bw
    if x.ndim == 3:
        gate = gate[:, None, :]
        hb = hb[:, None, :]
    return (x @ w + b) * gate + hb


if __name__ == "__main__":
    key = jax.random.PRNGKey(0)
    dim_c = 4
    dim_ctx = 1 + dim_c

    def make_params(k, dim_in, dim_out):
        k1, k2, k3, k4, k5 = jax.random.split(k, 5)
        lim_l = 1.0 / dim_in ** 0.5
        lim_h = 1.0 / dim_ctx ** 0.5
        w = jax.random.uniform(k1, (dim_in, dim_out), jnp.float32, -lim_l, lim_l)
        b = jax.random.uniform(k2, (dim_out,), jnp.float32, -lim_l, lim_l)
        gw = jax.random.uniform(k3, (dim_ctx, dim_out), jnp.float32, -lim_h, lim_h)
        gb = jax.random.uniform(k4, (dim_out,), jnp.float32, -lim_h, lim_h)
        bw = jax.random.uniform(k5, (dim_ctx, dim_out), jnp.float32, -lim_h, lim_h)
        return w, b, gw, gb, bw

    def run_case(k, B, S, dim_in, dim_out, *, mxu_dtype, atol, rtol, x_2d=False):
        kp, kx, kc = jax.random.split(k, 3)
        w, b, gw, gb, bw = make_params(kp, dim_in, dim_out)
        shape = (B, dim_in) if x_2d else (B, S, dim_in)
        x = jax.random.normal(kx, shape, jnp.float32)
        context = jax.random.normal(kc, (B, dim_ctx), jnp.float32)
        out = jax.block_until_ready(
            concat_scale_linear(context, x, w, b, gw, gb, bw, mxu_dtype=mxu_dtype))
        ref = _reference(context, x, w, b, gw, gb, bw)
        assert out.shape == ref.shape, (out.shape, ref.shape)
        err = float(jnp.max(jnp.abs(out.astype(jnp.float32) - ref)))
        assert jnp.allclose(out, ref, atol=atol, rtol=rtol), (
            f"max abs err {err} (B={B}, S={S}, dim_in={dim_in}, dim_out={dim_out})")

    keys = jax.random.split(key, 7)

    # 1) module-typical small shapes (3-D x) -> fused-XLA bypass path
    run_case(keys[0], 2, 8, 32, 32, mxu_dtype=jnp.bfloat16, atol=1e-5, rtol=1e-5)
    # 2) 2-D x path (module supports x.dim() == 2)
    run_case(keys[1], 2, 8, 32, 32, mxu_dtype=jnp.bfloat16, atol=1e-5, rtol=1e-5,
             x_2d=True)
    # 3) weight-resident Pallas path, bf16 MXU feed
    run_case(keys[2], 2, 256, 1024, 256, mxu_dtype=jnp.bfloat16, atol=5e-2, rtol=5e-2)
    # 4) weight-resident Pallas path, exact (input-dtype) MXU feed
    run_case(keys[3], 2, 256, 1024, 256, mxu_dtype=None, atol=1e-3, rtol=1e-3)
    # 5) K-tiled Pallas path (dim_in > 1024), bf16 MXU feed
    run_case(keys[4], 2, 256, 2048, 256, mxu_dtype=jnp.bfloat16, atol=5e-2, rtol=5e-2)
    # 6) K-tiled Pallas path, exact MXU feed (tightly checks the K accumulation)
    run_case(keys[5], 2, 256, 2048, 256, mxu_dtype=None, atol=1e-3, rtol=1e-3)
    # 7) non-dividing S / dim_out -> pl.cdiv grid with clipped partial blocks
    run_case(keys[6], 2, 600, 320, 384, mxu_dtype=jnp.bfloat16, atol=5e-2, rtol=5e-2)

    print("KERNEL_OK")
</pallas_src>

<mosaic_0001>
module attributes {stable_mosaic.version = 11 : i64} {
  func.func @_wres_kernel(%arg0: i32, %arg1: i32, %arg2: i32, %arg3: memref<1x256x1024xf32, #tpu.memory_space<vmem>>, %arg4: memref<1024x256xbf16, #tpu.memory_space<vmem>>, %arg5: memref<1x2x256xf32, #tpu.memory_space<vmem>>, %arg6: memref<1x256x256xf32, #tpu.memory_space<vmem>>) attributes {dimension_semantics = [#tpu.dimension_semantics<parallel>, #tpu.dimension_semantics<parallel>, #tpu.dimension_semantics<parallel>], iteration_bounds = array<i64: 2, 1, 1>, scalar_prefetch = 0 : i64, scratch_operands = 0 : i64, tpu.core_type = #tpu.core_type<tc>, window_params = [{transform_indices = @transform_0, window_bounds = array<i64: 1, 256, 1024>}, {transform_indices = @transform_1, window_bounds = array<i64: 1024, 256>}, {transform_indices = @transform_2, window_bounds = array<i64: 1, 2, 256>}, {transform_indices = @transform_3, window_bounds = array<i64: 1, 256, 256>}]} {
    %c0 = arith.constant 0 : index
    %c0_0 = arith.constant 0 : index
    %c0_1 = arith.constant 0 : index
    %0 = vector.load %arg3[%c0, %c0_0, %c0_1] : memref<1x256x1024xf32, #tpu.memory_space<vmem>>, vector<1x256x1024xf32>
    %1 = vector.shape_cast %0 : vector<1x256x1024xf32> to vector<256x1024xf32>
    %2 = arith.truncf %1 : vector<256x1024xf32> to vector<256x1024xbf16>
    %c0_2 = arith.constant 0 : index
    %c0_3 = arith.constant 0 : index
    %3 = vector.load %arg4[%c0_2, %c0_3] : memref<1024x256xbf16, #tpu.memory_space<vmem>>, vector<1024x256xbf16>
    %cst = arith.constant dense<0.000000e+00> : vector<256x256xf32>
    %4 = tpu.matmul %2, %3, %cst {dimension_numbers = #tpu.dot_dimension_numbers<[1], [0], [0], [1], [0, 0, 1, 1], [], []>} : vector<256x1024xbf16>, vector<1024x256xbf16>, vector<256x256xf32> -> vector<256x256xf32>
    %c0_4 = arith.constant 0 : index
    %c0_5 = arith.constant 0 : index
    %c0_6 = arith.constant 0 : index
    %5 = vector.load %arg5[%c0_4, %c0_5, %c0_6] : memref<1x2x256xf32, #tpu.memory_space<vmem>>, vector<1x2x256xf32>
    %6 = vector.shape_cast %5 : vector<1x2x256xf32> to vector<2x256xf32>
    %7 = vector.extract_strided_slice %6 {offsets = [0, 0], sizes = [1, 256], strides = [1, 1]} : vector<2x256xf32> to vector<1x256xf32>
    %8 = vector.broadcast %7 : vector<1x256xf32> to vector<256x256xf32>
    %9 = arith.mulf %4, %8 : vector<256x256xf32>
    %10 = vector.extract_strided_slice %6 {offsets = [1, 0], sizes = [1, 256], strides = [1, 1]} : vector<2x256xf32> to vector<1x256xf32>
    %11 = vector.broadcast %10 : vector<1x256xf32> to vector<256x256xf32>
    %12 = arith.addf %9, %11 : vector<256x256xf32>
    %c0_7 = arith.constant 0 : index
    %c0_8 = arith.constant 0 : index
    %c0_9 = arith.constant 0 : index
    %13 = vector.load %arg6[%c0_7, %c0_8, %c0_9] : memref<1x256x256xf32, #tpu.memory_space<vmem>>, vector<1x256x256xf32>
    %14 = vector.shape_cast %13 : vector<1x256x256xf32> to vector<256x256xf32>
    %15 = vector.shape_cast %12 : vector<256x256xf32> to vector<1x256x256xf32>
    tpu.vector_store %arg6[%c0_7, %c0_8, %c0_9], %15 {strides = array<i32>} : memref<1x256x256xf32, #tpu.memory_space<vmem>>, vector<1x256x256xf32>,
    return
  }
  func.func @transform_0(%arg0: i32, %arg1: i32, %arg2: i32) -> (i32, i32, i32) {
    %c0_i32 = arith.constant 0 : i32
    %c0_i32_0 = arith.constant 0 : i32
    return %arg0, %arg2, %c0_i32 : i32, i32, i32
  }
  func.func @transform_1(%arg0: i32, %arg1: i32, %arg2: i32) -> (i32, i32) {
    %c0_i32 = arith.constant 0 : i32
    %c0_i32_0 = arith.constant 0 : i32
    return %c0_i32, %arg1 : i32, i32
  }
  func.func @transform_2(%arg0: i32, %arg1: i32, %arg2: i32) -> (i32, i32, i32) {
    %c0_i32 = arith.constant 0 : i32
    %c0_i32_0 = arith.constant 0 : i32
    return %arg0, %c0_i32, %arg1 : i32, i32, i32
  }
  func.func @transform_3(%arg0: i32, %arg1: i32, %arg2: i32) -> (i32, i32, i32) {
    %c0_i32 = arith.constant 0 : i32
    return %arg0, %arg2, %arg1 : i32, i32, i32
  }
}

</mosaic_0001>

<bundles_post_ra>
// kernel: tpu_custom_call.1
= control target key start
LH: loop header
LB: loop body
LE: loop exit
PB: predicated region body
PF: predicated region fallthrough
CT: control target
= control target key end

     0   :  { %8 = vsyncpa [#allocation3], 0  ;;  %s4075_s0 = inlined_call_operand.hbm [shape: f32[2,256,1024], index: 0, kind: input, shape index: {}]   ;;  %s4076_s1 = inlined_call_operand.hbm [shape: bf16[1024,256], index: 1, kind: input, shape index: {}]   ;;  %s4077_s2 = inlined_call_operand.hbm [shape: f32[2,2,256], index: 2, kind: input, shape index: {}]   ;;  %s4078_s3 = inlined_call_operand.hbm [shape: f32[2,256,256], index: 3, kind: output, shape index: {}]  }
   0x1   :  { %10 = vsyncpa [#allocation3 + $0x1], 0 }
   0x2   :  { %11 = vsyncpa [#allocation6], 0 }
   0x3   :  { %12 = vsyncpa [#allocation4], 0 }
   0x4   :  { %14 = vsyncpa [#allocation4 + $0x1], 0  ;;  %s3214_s12 = smov 0   ;;  %s3216_s13 = smov 0  }
   0x5   :  { %s3218_s14 = smov 0   ;;  %s3220_s15 = smov 0  }
   0x6   :  { %s3222_s16 = smov 0   ;;  %s3224_s17 = smov 0  }
   0x7 LB: > { %s39_s18 = sadd.s32 1, %s3178_s16  ;;  %s48_s19 = sadd.s32 1, %s3170_s14  ;;  %s3182_s17 = sphi %s3224_s17, %s20_s17   ;;  %s3178_s16 = sphi %s3222_s16, %s4144_s16   ;;  %s3174_s15 = sphi %s3220_s15, %s4143_s15   ;;  %s3170_s14 = sphi %s3218_s14, %s4142_s14   ;;  %s3166_s13 = sphi %s3216_s13, %s4141_s13   ;;  %s3162_s12 = sphi %s3214_s12, %s4140_s12  }
   0x8   : > { %p41_p0 = scmp.ge.s32.totalorder %s39_s18, 2  ;;  %p55_p1 = scmp.ne.s32.totalorder %s3170_s14, %s3166_s13 }
   0x9   : > { %p56_p2 = scmp.eq.s32.totalorder %s3182_s17, 0  ;;  %p2762_p5 = scmp.lt.s32.totalorder %s3182_s17, 2 }
   0xa   : > { %s4146_s18 = smov (%p41_p0, %s39_s18), 0  ;;  %s185_s21 = sand.u32 1, %s3182_s17  }
   0xb   : > { %p57_p4 = por %p56_p2, %p55_p1  ;;  %s43_s20 = ssub.s32 %s3178_s16, %s4146_s18 }
   0xc   : > { %p46_p6 = scmp.eq.s32.totalorder %s43_s20, 0  ;;  %s187_s22 = sand.u32 1, %s3170_s14  }
   0xd   : > { %s2733_s23 = sshll.u32 %s3178_s16, 15  ;;  %s2589_s25 = sshll.u32 %s187_s22, 11 }
   0xe   : > { %s3262_s24 = scalar_select %p46_p6, %s3170_s14, %s48_s19  }
   0xf   : > { %s198_s28 = scalar_lea.hbm %s4075_s0, %s2733_s23  ;;  %p3269_p7 = pnand %p2762_p5, %p57_p4 }
  0x10   : > { %s189_s30 = scalar_lea.vmem [#allocation2], %s2589_s25  ;;  %s3273_s5 = scalar_lea.sflag [#allocation3], %s185_s21 }
  0x11   : > { %s199_s4 = sshll.u32 %s189_s30, 4  ;;  %p4080_p8 = pneg %p3269_p7  ;;  %s200_s4 = int_to_ptr.vmem [resolvable:$true] %s199_s4 }
  0x12   : > { %s3025_s6 = scalar_lea.vmem %s200_s4, 32768  ;;  %s3184_s7 = smov [#allocation2]  }
  0x13   : > { %p3026_p9 = scmp.ne.s32.totalorder %s200_s4, %s3025_s6  ;;  %s3030_s8 = sshll.u32 %s3184_s7, 4  ;;  %s3031_s8 = int_to_ptr.vmem [resolvable:$false] %s3030_s8 }
  0x14   : > { %s3032_s9 = scalar_lea.vmem %s3031_s8, 65536  ;;  %p3033_p12 = scmp.lt.s32.totalorder %s200_s4, %s3031_s8 }
  0x15   : > { %p3028_p10 = pnand %p3026_p9, %p4080_p8  ;;  %p3034_p13 = scmp.lt.s32.totalorder %s3032_s9, %s3025_s6 }
  0x17   : > { %p3029_p11 = pneg %p3028_p10  ;;  %p3035_p0 = por %p3034_p13, %p3033_p12 }
  0x19   : > { %p3036_p2 = pnand %p3035_p0, %p3029_p11 }
  0x1b   : > { %3039 = shalt.err (!%p3036_p2)
}
  0x1c   : > { %s3185_s10 = smov 1024   ;;  %s3186_s11 = smov 64  }
  0x1d   : > { %2753 = dma.hbm_to_vmem [thread:$0]  (!%p3269_p7), %s198_s28, 32768, %s200_s4, %s3273_s5, %s3185_s10, %s3185_s10, %s3186_s11  }
  0x1e   : > { %s3284_s19 = sadd.s32 4294967295, %s3182_s17   ;;  %s2585_s20 = sadd.s32 4294967294, %s3182_s17  }
  0x1f   : > { %p61_p4 = scmp.ne.s32.totalorder %s3166_s13, %s3162_s12  ;;  %p4079_p5 = scmp.eq.s32.totalorder %s3284_s19, 0 }
  0x20   : > { %p143_p6 = scmp.eq.s32.totalorder %s3284_s19, 1  ;;  %p149_p9 = scmp.eq.s32.totalorder %s2585_s20, 1 }
  0x21   : > { %p2586_p10 = scmp.ge.s32.totalorder %s3182_s17, 1  ;;  %p3294_p11 = por %p4079_p5, %p61_p4 }
  0x22   : > { %p3301_p12 = por %p143_p6, %p55_p1  ;;  %p3305_p13 = por %p149_p9, %p61_p4 }
  0x23   : > { %p156_p0 = scmp.lt.s32.totalorder %s3182_s17, 3  ;;  %s3187_s27 = smov [#allocation5]  }
  0x24   : > { %s4084_s23 = scalar_select %p3301_p12, 1, 0 }
  0x25   : > { %s4085_s25 = scalar_select %p3305_p13, 1, 0 }
  0x26   : > { %p3310_p2 = pnand %p2586_p10, %p156_p0  ;;  %s171_s28 = sshll.u32 %s3187_s27, 4  ;;  %s172_s28 = int_to_ptr.vmem [resolvable:$true] %s171_s28 }
  0x27   : > { %s2592_s30 = sshll.u32 %s187_s22, 2  ;;  %s2734_s4 = sshll.u32 %s3178_s16, 6 }
  0x28   : > { %p2746_p3 = pneg %p3310_p2  ;;  %s3328_s9 = scalar_lea.hbm %s4077_s2, %s2734_s4 }
  0x29   : > { %s213_s10 = scalar_lea.vmem [#allocation7], %s2592_s30  ;;  %s3051_s20 = scalar_lea.vmem %s172_s28, 16384 }
  0x2a   : > { %p3321_p1 = pnand %p2746_p3, %p4079_p5  ;;  %s223_s11 = sshll.u32 %s213_s10, 4  ;;  %s224_s11 = int_to_ptr.vmem [resolvable:$true] %s223_s11 }
  0x2b   : > { %p3052_p6 = scmp.ne.s32.totalorder %s172_s28, %s3051_s20  ;;  %p3059_p0 = scmp.lt.s32.totalorder %s172_s28, %s172_s28 }
  0x2c   : > { %p3042_p4 = pneg %p3321_p1  ;;  %p3060_p3 = scmp.lt.s32.totalorder %s3051_s20, %s3051_s20 }
  0x2e   : > { %p3054_p9 = pnand %p3052_p6, %p3042_p4  ;;  %p3061_p5 = por %p3060_p3, %p3059_p0 }
  0x30   : > { %p3055_p10 = pneg %p3054_p9 }
  0x32   : > { %p3062_p8 = pnand %p3061_p5, %p3055_p10 }
  0x34   : > { %3065 = shalt.err (!%p3062_p8)
}
  0x35   : > { %s3188_s22 = smov 128   ;;  %s3189_s27 = smov 8  }
  0x36   : > { %2749 = dma.hbm_to_vmem [thread:$0]  (!%p3321_p1), %s4076_s1, 16384, %s172_s28, [#allocation6], %s3188_s22, %s3188_s22, %s3189_s27  }
  0x37   : > { %s3079_s7 = scalar_lea.vmem %s224_s11, 64  ;;  %p4088_p12 = pneg %p3269_p7 }
  0x38   : > { %p3080_p13 = scmp.ne.s32.totalorder %s224_s11, %s3079_s7  ;;  %s3190_s8 = smov [#allocation7]  }
  0x39   : > { %s3084_s10 = sshll.u32 %s3190_s8, 4  ;;  %s3085_s10 = int_to_ptr.vmem [resolvable:$false] %s3084_s10 }
  0x3a   : > { %p3082_p4 = pnand %p3080_p13, %p4088_p12  ;;  %s3086_s20 = scalar_lea.vmem %s3085_s10, 128 }
  0x3b   : > { %p3087_p8 = scmp.lt.s32.totalorder %s224_s11, %s3085_s10  ;;  %p3088_p5 = scmp.lt.s32.totalorder %s3086_s20, %s3079_s7 }
  0x3c   : > { %p3083_p6 = pneg %p3082_p4 }
  0x3d   : > { %p3089_p9 = por %p3088_p5, %p3087_p8 }
  0x3f   : > { %p3090_p10 = pnand %p3089_p9, %p3083_p6 }
  0x41   : > { %3093 = shalt.err (!%p3090_p10)
}
  0x42   : > { %2756 = dma.hbm_to_vmem [thread:$0]  (!%p3269_p7), %s3328_s9, 64, %s224_s11, %s3273_s5  }
  0x43   : > { %232 = sbr.rel (%p3310_p2) target bundleno = 616 (0x268), region = 32 }
  0x48   : > { %s234_s28 = sand.u32 1, %s3284_s19   ;;  %s3348_s6 = sand.u32 1, %s3166_s13  }
  0x49   : > { %s2596_s22 = sshll.u32 %s3348_s6, 11  ;;  %s235_s27 = scalar_lea.sflag [#allocation3], %s234_s28 }
  0x4a   : > { %s3351_s4 = scalar_lea.vmem [#allocation2], %s2596_s22 }
  0x4b   : > { %3145 = dma.done.wait (%p3294_p11), %s235_s27, 32768  }
  0x4c   : > { %3147 = vsyncadd (%p3294_p11), %s235_s27, 4294934528  ;;  %p4089_p7 = scmp.eq.s32.totalorder %s3284_s19, 0 }
  0x4e   : > { %3149 = dma.done.wait (%p4089_p7), [#allocation6], 16384   ;;  %p4090_p12 = pmov %p4089_p7 }
  0x4f   : > { %s2598_s29 = sshll.u32 %s3348_s6, 2 }
  0x50   : > { %3151 = vsyncadd (%p4090_p12), [#allocation6], 4294950912  ;;  %s3362_s5 = scalar_lea.vmem [#allocation7], %s2598_s29 }
  0x51   : > { %3153 = dma.done.wait (%p3294_p11), %s235_s27, 64  }
  0x52   : > { %3155 = vsyncadd (%p3294_p11), %s235_s27, 4294967232  ;;  %v2820_v0 = vld [vmem:[#allocation5 + $0x74] ss:$8 sps:$4 sm:$0xff]   ;;  %v2824_v2 = vld [vmem:[#allocation5 + $0x70] ss:$8 sps:$4 sm:$0xff]   ;;  %s2599_s19 = sshll.u32 %s3348_s6, 9 }
  0x53   : > { %v2822_v1 = vld [vmem:[#allocation5 + $0x174] ss:$8 sps:$4 sm:$0xff]   ;;  %1436 = vmatprep.subr.bf16.mxu0 %v2820_v0  ;;  %v2825_v3 = vld [vmem:[#allocation5 + $0x170] ss:$8 sps:$4 sm:$0xff]   ;;  %v2826_v4 = vld [vmem:[#allocation5 + $0x64] ss:$8 sps:$4 sm:$0xff]  }
  0x54   : > { %1629 = vmatprep.subr.bf16.mxu1 %v2822_v1  ;;  %1437 = vmatpush1.bf16.msra.mxu0 %v2824_v2  ;;  %v2828_v5 = vld [vmem:[#allocation5 + $0x164] ss:$8 sps:$4 sm:$0xff]   ;;  %v2830_v6 = vld [vmem:[#allocation5 + $0x60] ss:$8 sps:$4 sm:$0xff]   ;;  %v2832_v8 = vld [vmem:[#allocation5 + $0x54] ss:$8 sps:$4 sm:$0xff]  }
  0x55   : > { %1630 = vmatpush1.bf16.msra.mxu1 %v2825_v3  ;;  %1438 = vmatprep.subr.bf16.mxu0 %v2826_v4  ;;  %v2831_v7 = vld [vmem:[#allocation5 + $0x160] ss:$8 sps:$4 sm:$0xff]   ;;  %v2834_v9 = vld [vmem:[#allocation5 + $0x154] ss:$8 sps:$4 sm:$0xff]   ;;  %v2836_v10 = vld [vmem:[#allocation5 + $0x50] ss:$8 sps:$4 sm:$0xff]  }
  0x56   : > { %1631 = vmatprep.subr.bf16.mxu1 %v2828_v5  ;;  %v2837_v11 = vld [vmem:[#allocation5 + $0x150] ss:$8 sps:$4 sm:$0xff]   ;;  %v2838_v12 = vld [vmem:[#allocation5 + $0x44] ss:$8 sps:$4 sm:$0xff]   ;;  %v2842_v14 = vld [vmem:[#allocation5 + $0x40] ss:$8 sps:$4 sm:$0xff]  }
  0x57   : > { %v2840_v13 = vld [vmem:[#allocation5 + $0x144] ss:$8 sps:$4 sm:$0xff]   ;;  %v2843_v15 = vld [vmem:[#allocation5 + $0x140] ss:$8 sps:$4 sm:$0xff]   ;;  %v2844_v16 = vld [vmem:[#allocation5 + $0x34] ss:$8 sps:$4 sm:$0xff]  }
  0x58   : > { %1439 = vmatpush1.bf16.msra.mxu0 %v2830_v6  ;;  %v2846_v17 = vld [vmem:[#allocation5 + $0x134] ss:$8 sps:$4 sm:$0xff]   ;;  %v2848_v18 = vld [vmem:[#allocation5 + $0x30] ss:$8 sps:$4 sm:$0xff]   ;;  %v2850_v20 = vld [vmem:[#allocation5 + $0x24] ss:$8 sps:$4 sm:$0xff]  }
  0x59   : > { %1632 = vmatpush1.bf16.msra.mxu1 %v2831_v7  ;;  %1440 = vmatprep.subr.bf16.mxu0 %v2832_v8  ;;  %v2849_v19 = vld [vmem:[#allocation5 + $0x130] ss:$8 sps:$4 sm:$0xff]   ;;  %v2852_v21 = vld [vmem:[#allocation5 + $0x124] ss:$8 sps:$4 sm:$0xff]   ;;  %v2854_v22 = vld [vmem:[#allocation5 + $0x20] ss:$8 sps:$4 sm:$0xff]  }
  0x5a   : > { %1633 = vmatprep.subr.bf16.mxu1 %v2834_v9  ;;  %v2855_v23 = vld [vmem:[#allocation5 + $0x120] ss:$8 sps:$4 sm:$0xff]   ;;  %v2856_v24 = vld [vmem:[#allocation5 + $0x14] ss:$8 sps:$4 sm:$0xff]   ;;  %v2860_v26 = vld [vmem:[#allocation5 + $0x10] ss:$8 sps:$4 sm:$0xff]  }
  0x5b   : > { %v2858_v25 = vld [vmem:[#allocation5 + $0x114] ss:$8 sps:$4 sm:$0xff]   ;;  %v2861_v27 = vld [vmem:[#allocation5 + $0x110] ss:$8 sps:$4 sm:$0xff]   ;;  %v2862_v28 = vld [vmem:[#allocation5 + $0x4] ss:$8 sps:$4 sm:$0xff]  }
  0x5c   : > { %1441 = vmatpush1.bf16.msra.mxu0 %v2836_v10  ;;  %v2864_v29 = vld [vmem:[#allocation5 + $0x104] ss:$8 sps:$4 sm:$0xff]   ;;  %v2866_v30 = vld [vmem:[#allocation5] ss:$8 sps:$4 sm:$0xff]   ;;  %v2868_v32 = vld [vmem:[#allocation5 + $0xf4] ss:$8 sps:$4 sm:$0xff]  }
  0x5d   : > { %1634 = vmatpush1.bf16.msra.mxu1 %v2837_v11  ;;  %1442 = vmatprep.subr.bf16.mxu0 %v2838_v12  ;;  %v2867_v31 = vld [vmem:[#allocation5 + $0x100] ss:$8 sps:$4 sm:$0xff]   ;;  %v2870_v33 = vld [vmem:[#allocation5 + $0x1f4] ss:$8 sps:$4 sm:$0xff]   ;;  %v2872_v34 = vld [vmem:[#allocation5 + $0xf0] ss:$8 sps:$4 sm:$0xff]  }
  0x5e   : > { %1635 = vmatprep.subr.bf16.mxu1 %v2840_v13  ;;  %v2873_v35 = vld [vmem:[#allocation5 + $0x1f0] ss:$8 sps:$4 sm:$0xff]   ;;  %v2874_v36 = vld [vmem:[#allocation5 + $0xe4] ss:$8 sps:$4 sm:$0xff]   ;;  %v2878_v38 = vld [vmem:[#allocation5 + $0xe0] ss:$8 sps:$4 sm:$0xff]  }
  0x5f   : > { %v2876_v37 = vld [vmem:[#allocation5 + $0x1e4] ss:$8 sps:$4 sm:$0xff]   ;;  %v2879_v39 = vld [vmem:[#allocation5 + $0x1e0] ss:$8 sps:$4 sm:$0xff]   ;;  %v2880_v40 = vld [vmem:[#allocation5 + $0xd4] ss:$8 sps:$4 sm:$0xff]  }
  0x60   : > { %1443 = vmatpush1.bf16.msra.mxu0 %v2842_v14  ;;  %v2882_v41 = vld [vmem:[#allocation5 + $0x1d4] ss:$8 sps:$4 sm:$0xff]   ;;  %v2884_v42 = vld [vmem:[#allocation5 + $0xd0] ss:$8 sps:$4 sm:$0xff]   ;;  %v2886_v44 = vld [vmem:[#allocation5 + $0xc4] ss:$8 sps:$4 sm:$0xff]  }
  0x61   : > { %1636 = vmatpush1.bf16.msra.mxu1 %v2843_v15  ;;  %1444 = vmatprep.subr.bf16.mxu0 %v2844_v16  ;;  %v2885_v43 = vld [vmem:[#allocation5 + $0x1d0] ss:$8 sps:$4 sm:$0xff]   ;;  %v2888_v45 = vld [vmem:[#allocation5 + $0x1c4] ss:$8 sps:$4 sm:$0xff]   ;;  %v2890_v50 = vld [vmem:[#allocation5 + $0xc0] ss:$8 sps:$4 sm:$0xff]  }
  0x62   : > { %1637 = vmatprep.subr.bf16.mxu1 %v2846_v17  ;;  %v285_v46 = vld [vmem:[%s3351_s4 + $0x8] sm:$0xff]  ;;  %v287_v48 = vld [vmem:[%s3351_s4 + $0x18] sm:$0xff]  ;;  %v284_v6 = vld [vmem:[%s3351_s4] sm:$0xff]  ;;  %s3769_s21 = scalar_lea.vmem [#allocation8], %s2599_s19  ;;  %s2735_s26 = sshll.u32 %s3174_s15, 13 }
  0x63   : > { %v293_v47 = vld [vmem:[%s3351_s4 + $0x48] sm:$0xff]  ;;  %v295_v49 = vld [vmem:[%s3351_s4 + $0x58] sm:$0xff]  ;;  %v292_v7 = vld [vmem:[%s3351_s4 + $0x40] sm:$0xff]  ;;  %s2457_s9 = sshll.u32 %s3769_s21, 4  ;;  %s4022_s7 = scalar_lea.hbm %s4078_s3, %s2735_s26  ;;  %s4024_s9 = int_to_ptr.vmem [resolvable:$true] %s2457_s9 }
  0x64   : > { %1445 = vmatpush1.bf16.msra.mxu0 %v2848_v18  ;;  %v2891_v51 = vld [vmem:[#allocation5 + $0x1c0] ss:$8 sps:$4 sm:$0xff]   ;;  %v2892_v52 = vld [vmem:[#allocation5 + $0xb4] ss:$8 sps:$4 sm:$0xff]   ;;  %v541_v53 = vpack.c.bf16 %v293_v47, %v285_v46  ;;  %v543_v54 = vpack.c.bf16 %v295_v49, %v287_v48  ;;  %v2896_v56 = vld [vmem:[#allocation5 + $0xb0] ss:$8 sps:$4 sm:$0xff]   ;;  %v540_v16 = vpack.c.bf16 %v292_v7, %v284_v6 }
  0x65   : > { %1638 = vmatpush1.bf16.msra.mxu1 %v2849_v19  ;;  %1446 = vmatprep.subr.bf16.mxu0 %v2850_v20  ;;  %v2894_v55 = vld [vmem:[#allocation5 + $0x1b4] ss:$8 sps:$4 sm:$0xff]   ;;  %v2897_v57 = vld [vmem:[#allocation5 + $0x1b0] ss:$8 sps:$4 sm:$0xff]   ;;  %v2898_v58 = vld [vmem:[#allocation5 + $0xa4] ss:$8 sps:$4 sm:$0xff]  }
  0x66   : > { %1639 = vmatprep.subr.bf16.mxu1 %v2852_v21  ;;  %1468 = vmatprep.mubr.bf16.mxu0 %v541_v53  ;;  %v2900_v59 = vld [vmem:[#allocation5 + $0x1a4] ss:$8 sps:$4 sm:$0xff]   ;;  %v2902_v60 = vld [vmem:[#allocation5 + $0xa0] ss:$8 sps:$4 sm:$0xff]   ;;  %v2904_v62 = vld [vmem:[#allocation5 + $0x94] ss:$8 sps:$4 sm:$0xff]  }
  0x67   : > { %1661 = vmatprep.mubr.bf16.mxu1 %v543_v54  ;;  %v2903_v61 = vld [vmem:[#allocation5 + $0x1a0] ss:$8 sps:$4 sm:$0xff]   ;;  %v2906_v63 = vld [vmem:[#allocation5 + $0x194] ss:$8 sps:$4 sm:$0xff]   ;;  %v2908_v0 = vld [vmem:[#allocation5 + $0x90] ss:$8 sps:$4 sm:$0xff]  }
  0x68   : > { %1447 = vmatpush1.bf16.msra.mxu0 %v2854_v22  ;;  %v2909_v1 = vld [vmem:[#allocation5 + $0x190] ss:$8 sps:$4 sm:$0xff]   ;;  %v2910_v2 = vld [vmem:[#allocation5 + $0x84] ss:$8 sps:$4 sm:$0xff]   ;;  %v2914_v4 = vld [vmem:[#allocation5 + $0x80] ss:$8 sps:$4 sm:$0xff]  }
  0x69   : > { %1640 = vmatpush1.bf16.msra.mxu1 %v2855_v23  ;;  %1448 = vmatprep.subr.bf16.mxu0 %v2856_v24  ;;  %v2912_v3 = vld [vmem:[#allocation5 + $0x184] ss:$8 sps:$4 sm:$0xff]   ;;  %v2915_v5 = vld [vmem:[#allocation5 + $0x180] ss:$8 sps:$4 sm:$0xff]   ;;  %v286_v8 = vld [vmem:[%s3351_s4 + $0x10] sm:$0xff]  ;;  %s2439_s15 = scalar_lea.sflag [#allocation4], %s3348_s6 }
  0x6a   : > { %1641 = vmatprep.subr.bf16.mxu1 %v2858_v25  ;;  %v294_v9 = vld [vmem:[%s3351_s4 + $0x50] sm:$0xff]  ;;  %v301_v12 = vld [vmem:[%s3351_s4 + $0x88] sm:$0xff]  ;;  %v303_v14 = vld [vmem:[%s3351_s4 + $0x98] sm:$0xff]  ;;  %s3094_s8 = scalar_lea.vmem %s4024_s9, 8192  ;;  %p4137_p13 = scmp.ne.s32.totalorder %s4084_s23, 0 }
  0x6b   : > { %v2918_v10 = vld [vmem:[#allocation5 + $0x274] ss:$8 sps:$4 sm:$0xff]   ;;  %v309_v13 = vld [vmem:[%s3351_s4 + $0xc8] sm:$0xff]  ;;  %v542_v17 = vpack.c.bf16 %v294_v9, %v286_v8  ;;  %v2916_v18 = vld [vmem:[#allocation5 + $0x270] ss:$8 sps:$4 sm:$0xff]   ;;  %p3095_p11 = scmp.ne.s32.totalorder %s4024_s9, %s3094_s8  ;;  %s3191_s10 = smov [#allocation8]  }
  0x6c   : > { %1449 = vmatpush1.bf16.msra.mxu0 %v2860_v26  ;;  %v2921_v11 = vld [vmem:[#allocation5 + $0x374] ss:$8 sps:$4 sm:$0xff]   ;;  %v2919_v19 = vld [vmem:[#allocation5 + $0x370] ss:$8 sps:$4 sm:$0xff]   ;;  %v549_v20 = vpack.c.bf16 %v309_v13, %v301_v12  ;;  %v2924_v22 = vld [vmem:[#allocation5 + $0x264] ss:$8 sps:$4 sm:$0xff]  }
  0x6d   : > { %1642 = vmatpush1.bf16.msra.mxu1 %v2861_v27  ;;  %1450 = vmatprep.subr.bf16.mxu0 %v2862_v28  ;;  %v311_v15 = vld [vmem:[%s3351_s4 + $0xd8] sm:$0xff]  ;;  %v300_v23 = vld [vmem:[%s3351_s4 + $0x80] sm:$0xff]  ;;  %v302_v25 = vld [vmem:[%s3351_s4 + $0x90] sm:$0xff]  ;;  %p3096_p2 = pnand %p3095_p11, %p4137_p13  ;;  %s3098_s20 = sshll.u32 %s3191_s10, 4  ;;  %s3099_s20 = int_to_ptr.vmem [resolvable:$false] %s3098_s20 }
  0x6e   : > { %1643 = vmatprep.subr.bf16.mxu1 %v2864_v29  ;;  %v551_v21 = vpack.c.bf16 %v311_v15, %v303_v14  ;;  %v308_v24 = vld [vmem:[%s3351_s4 + $0xc0] sm:$0xff]  ;;  %v310_v26 = vld [vmem:[%s3351_s4 + $0xd0] sm:$0xff]  ;;  %v333_v48 = vld [vmem:[%s3351_s4 + $0x188] sm:$0xff]  ;;  %s3100_s28 = scalar_lea.vmem %s3099_s20, 16384  ;;  %p3101_p0 = scmp.lt.s32.totalorder %s4024_s9, %s3099_s20 }
  0x6f   : > { %v2922_v27 = vld [vmem:[#allocation5 + $0x260] ss:$8 sps:$4 sm:$0xff]   ;;  %v2927_v29 = vld [vmem:[#allocation5 + $0x364] ss:$8 sps:$4 sm:$0xff]   ;;  %v326_v47 = vld [vmem:[%s3351_s4 + $0x150] sm:$0xff]  ;;  %p3097_p1 = pneg %p3096_p2  ;;  %p3102_p3 = scmp.lt.s32.totalorder %s3100_s28, %s3094_s8 }
  0x70   : > { %1451 = vmatpush1.bf16.msra.mxu0 %v2866_v30  ;;  %v2925_v28 = vld [vmem:[#allocation5 + $0x360] ss:$8 sps:$4 sm:$0xff]   ;;  %v2939_v46 = vld [vmem:[#allocation5 + $0x344] ss:$8 sps:$4 sm:$0xff]   ;;  %v2942_v54 = vld [vmem:[#allocation5 + $0x234] ss:$8 sps:$4 sm:$0xff]  }
  0x71   : > { %1644 = vmatpush1.bf16.msra.mxu1 %v2867_v31  ;;  %1452 = vmatprep.subr.bf16.mxu0 %v2868_v32  ;;  %v317_v30 = vld [vmem:[%s3351_s4 + $0x108] sm:$0xff]  ;;  %v319_v32 = vld [vmem:[%s3351_s4 + $0x118] sm:$0xff]  ;;  %p3103_p4 = por %p3102_p3, %p3101_p0 }
  0x72   : > { %1645 = vmatprep.subr.bf16.mxu1 %v2870_v33  ;;  %v325_v31 = vld [vmem:[%s3351_s4 + $0x148] sm:$0xff]  ;;  %v327_v33 = vld [vmem:[%s3351_s4 + $0x158] sm:$0xff] }
  0x73   : > { %v341_v49 = vld [vmem:[%s3351_s4 + $0x1c8] sm:$0xff]  ;;  %v351_v6 = vld [vmem:[%s3351_s4 + $0x218] sm:$0xff]  ;;  %p3104_p6 = pnand %p3103_p4, %p3097_p1 }
  0x74   : > { %1453 = vmatpush2.bf16.msra.mxu0 %v2872_v34  ;;  %v2930_v34 = vld [vmem:[#allocation5 + $0x254] ss:$8 sps:$4 sm:$0xff]   ;;  %v2937_v53 = vld [vmem:[#allocation5 + $0x340] ss:$8 sps:$4 sm:$0xff]  }
  0x75   : > { %1646 = vmatpush2.bf16.msra.mxu1 %v2873_v35  ;;  %1454 = vmatprep.subr.bf16.mxu0 %v2874_v36  ;;  %v2933_v35 = vld [vmem:[#allocation5 + $0x354] ss:$8 sps:$4 sm:$0xff]   ;;  %v548_v36 = vpack.c.bf16 %v308_v24, %v300_v23  ;;  %v2946_v8 = vld [vmem:[#allocation5 + $0x220] ss:$8 sps:$4 sm:$0xff]  }
  0x76   : > { %1647 = vmatprep.subr.bf16.mxu1 %v2876_v37  ;;  %v550_v37 = vpack.c.bf16 %v310_v26, %v302_v25  ;;  %v359_v7 = vld [vmem:[%s3351_s4 + $0x258] sm:$0xff]  ;;  %v2949_v9 = vld [vmem:[#allocation5 + $0x320] ss:$8 sps:$4 sm:$0xff]   ;;  %v358_v23 = vld [vmem:[%s3351_s4 + $0x250] sm:$0xff] }
  0x77   : > { %v575_v15 = vpack.c.bf16 %v359_v7, %v351_v6  ;;  %v365_v24 = vld [vmem:[%s3351_s4 + $0x288] sm:$0xff]  ;;  %v367_v26 = vld [vmem:[%s3351_s4 + $0x298] sm:$0xff] }
  0x78   : > { %1455 = vmatpush2.bf16.msra.mxu0 %v2878_v38  ;;  %v557_v38 = vpack.c.bf16 %v325_v31, %v317_v30  ;;  %v373_v25 = vld [vmem:[%s3351_s4 + $0x2c8] sm:$0xff]  ;;  %v2966_v30 = vld [vmem:[#allocation5 + $0x2f4] ss:$8 sps:$4 sm:$0xff]  }
  0x79   : > { %1648 = vmatpush2.bf16.msra.mxu1 %v2879_v39  ;;  %1456 = vmatprep.subr.bf16.mxu0 %v2880_v40  ;;  %v559_v39 = vpack.c.bf16 %v327_v33, %v319_v32  ;;  %v2928_v40 = vld [vmem:[#allocation5 + $0x250] ss:$8 sps:$4 sm:$0xff]   ;;  %v2969_v31 = vld [vmem:[#allocation5 + $0x3f4] ss:$8 sps:$4 sm:$0xff]  }
  0x7a   : > { %1649 = vmatprep.subr.bf16.mxu1 %v2882_v41  ;;  %v2931_v41 = vld [vmem:[#allocation5 + $0x350] ss:$8 sps:$4 sm:$0xff]   ;;  %v2990_v6 = vld [vmem:[#allocation5 + $0x2b4] ss:$8 sps:$4 sm:$0xff]  }
  0x7c   : > { %1457 = vmatpush2.bf16.msra.mxu0 %v2884_v42  ;;  %v316_v42 = vld [vmem:[%s3351_s4 + $0x100] sm:$0xff] }
  0x7d   : > { %1650 = vmatpush2.bf16.msra.mxu1 %v2885_v43  ;;  %1458 = vmatprep.subr.bf16.mxu0 %v2886_v44  ;;  %v324_v43 = vld [vmem:[%s3351_s4 + $0x140] sm:$0xff]  ;;  %v318_v44 = vld [vmem:[%s3351_s4 + $0x110] sm:$0xff] }
  0x7e   : > { %1651 = vmatprep.subr.bf16.mxu1 %v2888_v45  ;;  %v2936_v45 = vld [vmem:[#allocation5 + $0x244] ss:$8 sps:$4 sm:$0xff]  }
  0x80   : > { %1459 = vmatpush2.bf16.msra.mxu0 %v2890_v50  ;;  %v335_v50 = vld [vmem:[%s3351_s4 + $0x198] sm:$0xff] }
  0x81   : > { %1652 = vmatpush2.bf16.msra.mxu1 %v2891_v51  ;;  %1460 = vmatprep.subr.bf16.mxu0 %v2892_v52  ;;  %v343_v51 = vld [vmem:[%s3351_s4 + $0x1d8] sm:$0xff]  ;;  %v2934_v52 = vld [vmem:[#allocation5 + $0x240] ss:$8 sps:$4 sm:$0xff]  }
  0x82   : > { %1653 = vmatprep.subr.bf16.mxu1 %v2894_v55  ;;  %v2945_v55 = vld [vmem:[#allocation5 + $0x334] ss:$8 sps:$4 sm:$0xff]  }
  0x84   : > { %1461 = vmatpush2.bf16.msra.mxu0 %v2896_v56  ;;  %v556_v56 = vpack.c.bf16 %v324_v43, %v316_v42  ;;  %v2972_v42 = vld [vmem:[#allocation5 + $0x2e4] ss:$8 sps:$4 sm:$0xff]  }
  0x85   : > { %1654 = vmatpush2.bf16.msra.mxu1 %v2897_v57  ;;  %1462 = vmatprep.subr.bf16.mxu0 %v2898_v58  ;;  %v558_v57 = vpack.c.bf16 %v326_v47, %v318_v44  ;;  %v565_v58 = vpack.c.bf16 %v341_v49, %v333_v48  ;;  %v2975_v43 = vld [vmem:[#allocation5 + $0x3e4] ss:$8 sps:$4 sm:$0xff]   ;;  %v391_v47 = vld [vmem:[%s3351_s4 + $0x358] sm:$0xff]  ;;  %v2970_v48 = vld [vmem:[#allocation5 + $0x2e0] ss:$8 sps:$4 sm:$0xff]  }
  0x86   : > { %1655 = vmatprep.subr.bf16.mxu1 %v2900_v59  ;;  %v567_v59 = vpack.c.bf16 %v343_v51, %v335_v50  ;;  %v381_v44 = vld [vmem:[%s3351_s4 + $0x308] sm:$0xff]  ;;  %v2978_v50 = vld [vmem:[#allocation5 + $0x2d4] ss:$8 sps:$4 sm:$0xff]  }
  0x87   : > { %v2973_v49 = vld [vmem:[#allocation5 + $0x3e0] ss:$8 sps:$4 sm:$0xff]   ;;  %v2981_v51 = vld [vmem:[#allocation5 + $0x3d4] ss:$8 sps:$4 sm:$0xff]  }
  0x88   : > { %1463 = vmatpush2.bf16.msra.mxu0 %v2902_v60  ;;  %v2940_v60 = vld [vmem:[#allocation5 + $0x230] ss:$8 sps:$4 sm:$0xff]  }
  0x89   : > { %1656 = vmatpush2.bf16.msra.mxu1 %v2903_v61  ;;  %1464 = vmatprep.subr.bf16.mxu0 %v2904_v62  ;;  %v2943_v61 = vld [vmem:[#allocation5 + $0x330] ss:$8 sps:$4 sm:$0xff]   ;;  %v332_v62 = vld [vmem:[%s3351_s4 + $0x180] sm:$0xff] }
  0x8a   : > { %1657 = vmatprep.subr.bf16.mxu1 %v2906_v63  ;;  %v340_v63 = vld [vmem:[%s3351_s4 + $0x1c0] sm:$0xff] }
  0x8b   : > { %v564_v12 = vpack.c.bf16 %v340_v63, %v332_v62  ;;  %v2987_v62 = vld [vmem:[#allocation5 + $0x3c4] ss:$8 sps:$4 sm:$0xff]   ;;  %v390_v63 = vld [vmem:[%s3351_s4 + $0x350] sm:$0xff] }
  0x8c   : > { %1465 = vmatpush2.bf16.msra.mxu0 %v2908_v0  ;;  %v334_v0 = vld [vmem:[%s3351_s4 + $0x190] sm:$0xff] }
  0x8d   : > { %1658 = vmatpush2.bf16.msra.mxu1 %v2909_v1  ;;  %1466 = vmatprep.subr.bf16.mxu0 %v2910_v2  ;;  %v342_v1 = vld [vmem:[%s3351_s4 + $0x1d0] sm:$0xff]  ;;  %v2948_v2 = vld [vmem:[#allocation5 + $0x224] ss:$8 sps:$4 sm:$0xff]  }
  0x8e   : > { %1659 = vmatprep.subr.bf16.mxu1 %v2912_v3  ;;  %v2951_v3 = vld [vmem:[#allocation5 + $0x324] ss:$8 sps:$4 sm:$0xff]   ;;  %v566_v13 = vpack.c.bf16 %v342_v1, %v334_v0 }
  0x8f   : > { %v397_v0 = vld [vmem:[%s3351_s4 + $0x388] sm:$0xff] }
  0x90   : > { %1467 = vmatpush2.bf16.msra.mxu0 %v2914_v4  ;;  %v349_v4 = vld [vmem:[%s3351_s4 + $0x208] sm:$0xff] }
  0x91   : > { %1660 = vmatpush2.bf16.msra.mxu1 %v2915_v5  ;;  %1822 = vmatprep.subr.bf16.mxu0 %v2918_v10  ;;  %v357_v5 = vld [vmem:[%s3351_s4 + $0x248] sm:$0xff]  ;;  %v2954_v10 = vld [vmem:[#allocation5 + $0x214] ss:$8 sps:$4 sm:$0xff]  }
  0x92   : > { %2015 = vmatprep.subr.bf16.mxu1 %v2921_v11  ;;  %v2957_v11 = vld [vmem:[#allocation5 + $0x314] ss:$8 sps:$4 sm:$0xff]   ;;  %v573_v14 = vpack.c.bf16 %v357_v5, %v349_v4  ;;  %v405_v1 = vld [vmem:[%s3351_s4 + $0x3c8] sm:$0xff] }
  0x93   : > { %1469 = vmatmul.mubr.bf16.vlgmr.msra.gmra.mxu0 %v540_v16  ;;  %v2952_v16 = vld [vmem:[#allocation5 + $0x210] ss:$8 sps:$4 sm:$0xff]   ;;  %v2982_v4 = vld [vmem:[#allocation5 + $0x2c0] ss:$8 sps:$4 sm:$0xff]  }
  0x94   : > { %1662 = vmatmul.mubr.bf16.vlgmr.msra.gmra.mxu1 %v542_v17  ;;  %1823 = vmatpush1.bf16.msra.mxu0 %v2916_v18  ;;  %v2955_v17 = vld [vmem:[#allocation5 + $0x310] ss:$8 sps:$4 sm:$0xff]   ;;  %v348_v18 = vld [vmem:[%s3351_s4 + $0x200] sm:$0xff] }
  0x95   : > { %2016 = vmatpush1.bf16.msra.mxu1 %v2919_v19  ;;  %1478 = vmatprep.mubr.bf16.mxu0 %v549_v20  ;;  %v356_v19 = vld [vmem:[%s3351_s4 + $0x240] sm:$0xff]  ;;  %v350_v20 = vld [vmem:[%s3351_s4 + $0x210] sm:$0xff] }
  0x96   : > { %1671 = vmatprep.mubr.bf16.mxu1 %v551_v21  ;;  %1824 = vmatprep.subr.bf16.mxu0 %v2924_v22  ;;  %v2960_v21 = vld [vmem:[#allocation5 + $0x204] ss:$8 sps:$4 sm:$0xff]   ;;  %v572_v32 = vpack.c.bf16 %v356_v19, %v348_v18  ;;  %v574_v33 = vpack.c.bf16 %v358_v23, %v350_v20  ;;  %v2985_v5 = vld [vmem:[#allocation5 + $0x3c0] ss:$8 sps:$4 sm:$0xff]   ;;  %v415_v20 = vld [vmem:[%s3351_s4 + $0x418] sm:$0xff] }
  0x97   : > { %2017 = vmatprep.subr.bf16.mxu1 %v2927_v29  ;;  %v2963_v22 = vld [vmem:[#allocation5 + $0x304] ss:$8 sps:$4 sm:$0xff]   ;;  %v2961_v29 = vld [vmem:[#allocation5 + $0x300] ss:$8 sps:$4 sm:$0xff]  }
  0x98   : > { %1825 = vmatpush1.bf16.msra.mxu0 %v2922_v27  ;;  %v375_v27 = vld [vmem:[%s3351_s4 + $0x2d8] sm:$0xff]  ;;  %v413_v18 = vld [vmem:[%s3351_s4 + $0x408] sm:$0xff] }
  0x99   : > { %2018 = vmatpush1.bf16.msra.mxu1 %v2925_v28  ;;  %1826 = vmatprep.subr.bf16.mxu0 %v2930_v34  ;;  %v2958_v28 = vld [vmem:[#allocation5 + $0x200] ss:$8 sps:$4 sm:$0xff]   ;;  %v581_v34 = vpack.c.bf16 %v373_v25, %v365_v24  ;;  %v2999_v25 = vld [vmem:[#allocation5 + $0x3a4] ss:$8 sps:$4 sm:$0xff]  }
  0x9a   : > { %2019 = vmatprep.subr.bf16.mxu1 %v2933_v35  ;;  %v583_v35 = vpack.c.bf16 %v375_v27, %v367_v26  ;;  %v421_v19 = vld [vmem:[%s3351_s4 + $0x448] sm:$0xff] }
  0x9b   : > { %1479 = vmatmul.mubr.bf16.gmra.mxu0 %v548_v36  ;;  %v2964_v36 = vld [vmem:[#allocation5 + $0x2f0] ss:$8 sps:$4 sm:$0xff]   ;;  %v2994_v23 = vld [vmem:[#allocation5 + $0x2a0] ss:$8 sps:$4 sm:$0xff]  }
  0x9c   : > { %1672 = vmatmul.mubr.bf16.gmra.mxu1 %v550_v37  ;;  %1488 = vmatprep.mubr.bf16.mxu0 %v557_v38  ;;  %v2967_v37 = vld [vmem:[#allocation5 + $0x3f0] ss:$8 sps:$4 sm:$0xff]   ;;  %v364_v38 = vld [vmem:[%s3351_s4 + $0x280] sm:$0xff] }
  0x9d   : > { %1681 = vmatprep.mubr.bf16.mxu1 %v559_v39  ;;  %1827 = vmatpush1.bf16.msra.mxu0 %v2928_v40  ;;  %v372_v39 = vld [vmem:[%s3351_s4 + $0x2c0] sm:$0xff]  ;;  %v366_v40 = vld [vmem:[%s3351_s4 + $0x290] sm:$0xff] }
  0x9e   : > { %2020 = vmatpush1.bf16.msra.mxu1 %v2931_v41  ;;  %1828 = vmatprep.subr.bf16.mxu0 %v2936_v45  ;;  %v374_v41 = vld [vmem:[%s3351_s4 + $0x2d0] sm:$0xff]  ;;  %v389_v45 = vld [vmem:[%s3351_s4 + $0x348] sm:$0xff] }
  0x9f   : > { %2021 = vmatprep.subr.bf16.mxu1 %v2939_v46  ;;  %v383_v46 = vld [vmem:[%s3351_s4 + $0x318] sm:$0xff]  ;;  %v2997_v24 = vld [vmem:[#allocation5 + $0x3a0] ss:$8 sps:$4 sm:$0xff]  }
  0xa1   : > { %1829 = vmatpush1.bf16.msra.mxu0 %v2934_v52  ;;  %v580_v52 = vpack.c.bf16 %v372_v39, %v364_v38  ;;  %v429_v38 = vld [vmem:[%s3351_s4 + $0x488] sm:$0xff] }
  0xa2   : > { %2022 = vmatpush1.bf16.msra.mxu1 %v2937_v53  ;;  %1830 = vmatprep.subr.bf16.mxu0 %v2942_v54  ;;  %v582_v53 = vpack.c.bf16 %v374_v41, %v366_v40  ;;  %v589_v54 = vpack.c.bf16 %v389_v45, %v381_v44  ;;  %v437_v39 = vld [vmem:[%s3351_s4 + $0x4c8] sm:$0xff]  ;;  %v431_v40 = vld [vmem:[%s3351_s4 + $0x498] sm:$0xff] }
  0xa3   : > { %2023 = vmatprep.subr.bf16.mxu1 %v2945_v55  ;;  %1489 = vmatmul.mubr.bf16.gmra.mxu0 %v556_v56  ;;  %v591_v55 = vpack.c.bf16 %v391_v47, %v383_v46  ;;  %v2976_v56 = vld [vmem:[#allocation5 + $0x2d0] ss:$8 sps:$4 sm:$0xff]   ;;  %v3009_v46 = vld [vmem:[#allocation5 + $0x380] ss:$8 sps:$4 sm:$0xff]   ;;  %v3011_v47 = vld [vmem:[#allocation5 + $0x384] ss:$8 sps:$4 sm:$0xff]  }
  0xa4   : > { %1682 = vmatmul.mubr.bf16.gmra.mxu1 %v558_v57  ;;  %1498 = vmatprep.mubr.bf16.mxu0 %v565_v58  ;;  %v2979_v57 = vld [vmem:[#allocation5 + $0x3d0] ss:$8 sps:$4 sm:$0xff]   ;;  %v380_v58 = vld [vmem:[%s3351_s4 + $0x300] sm:$0xff] }
  0xa5   : > { %1691 = vmatprep.mubr.bf16.mxu1 %v567_v59  ;;  %1831 = vmatpush1.bf16.msra.mxu0 %v2940_v60  ;;  %v388_v59 = vld [vmem:[%s3351_s4 + $0x340] sm:$0xff]  ;;  %v382_v60 = vld [vmem:[%s3351_s4 + $0x310] sm:$0xff]  ;;  %v439_v41 = vld [vmem:[%s3351_s4 + $0x4d8] sm:$0xff] }
  0xa6   : > { %2024 = vmatpush1.bf16.msra.mxu1 %v2943_v61  ;;  %1832 = vmatprep.subr.bf16.mxu0 %v2948_v2  ;;  %v2984_v61 = vld [vmem:[#allocation5 + $0x2c4] ss:$8 sps:$4 sm:$0xff]   ;;  %v399_v2 = vld [vmem:[%s3351_s4 + $0x398] sm:$0xff]  ;;  %v588_v7 = vpack.c.bf16 %v388_v59, %v380_v58 }
  0xa7   : > { %2025 = vmatprep.subr.bf16.mxu1 %v2951_v3  ;;  %v407_v3 = vld [vmem:[%s3351_s4 + $0x3d8] sm:$0xff] }
  0xa9   : > { %1833 = vmatpush1.bf16.msra.mxu0 %v2946_v8  ;;  %v590_v8 = vpack.c.bf16 %v390_v63, %v382_v60  ;;  %v452_v63 = vld [vmem:[%s3351_s4 + $0x540] sm:$0xff] }
  0xaa   : > { %2026 = vmatpush1.bf16.msra.mxu1 %v2949_v9  ;;  %1834 = vmatprep.subr.bf16.mxu0 %v2954_v10  ;;  %v2993_v9 = vld [vmem:[#allocation5 + $0x3b4] ss:$8 sps:$4 sm:$0xff]   ;;  %v597_v10 = vpack.c.bf16 %v405_v1, %v397_v0 }
  0xab   : > { %2027 = vmatprep.subr.bf16.mxu1 %v2957_v11  ;;  %1499 = vmatmul.mubr.bf16.gmra.mxu0 %v564_v12  ;;  %v599_v11 = vpack.c.bf16 %v407_v3, %v399_v2  ;;  %v2988_v12 = vld [vmem:[#allocation5 + $0x2b0] ss:$8 sps:$4 sm:$0xff]   ;;  %v461_v2 = vld [vmem:[%s3351_s4 + $0x588] sm:$0xff] }
  0xac   : > { %1692 = vmatmul.mubr.bf16.gmra.mxu1 %v566_v13  ;;  %1508 = vmatprep.mubr.bf16.mxu0 %v573_v14  ;;  %v2991_v13 = vld [vmem:[#allocation5 + $0x3b0] ss:$8 sps:$4 sm:$0xff]   ;;  %v396_v14 = vld [vmem:[%s3351_s4 + $0x380] sm:$0xff]  ;;  %v469_v3 = vld [vmem:[%s3351_s4 + $0x5c8] sm:$0xff] }
  0xad   : > { %1701 = vmatprep.mubr.bf16.mxu1 %v575_v15  ;;  %1835 = vmatpush1.bf16.msra.mxu0 %v2952_v16  ;;  %v404_v15 = vld [vmem:[%s3351_s4 + $0x3c0] sm:$0xff]  ;;  %v398_v16 = vld [vmem:[%s3351_s4 + $0x390] sm:$0xff] }
  0xae   : > { %2028 = vmatpush1.bf16.msra.mxu1 %v2955_v17  ;;  %1836 = vmatprep.subr.bf16.mxu0 %v2960_v21  ;;  %v406_v17 = vld [vmem:[%s3351_s4 + $0x3d0] sm:$0xff]  ;;  %v2996_v21 = vld [vmem:[#allocation5 + $0x2a4] ss:$8 sps:$4 sm:$0xff]   ;;  %v596_v26 = vpack.c.bf16 %v404_v15, %v396_v14 }
  0xaf   : > { %2029 = vmatprep.subr.bf16.mxu1 %v2963_v22  ;;  %v423_v22 = vld [vmem:[%s3351_s4 + $0x458] sm:$0xff]  ;;  %v598_v27 = vpack.c.bf16 %v406_v17, %v398_v16  ;;  %v446_v0 = vld [vmem:[%s3351_s4 + $0x510] sm:$0xff]  ;;  %v477_v14 = vld [vmem:[%s3351_s4 + $0x608] sm:$0xff] }
  0xb0   : > { %v454_v1 = vld [vmem:[%s3351_s4 + $0x550] sm:$0xff]  ;;  %v485_v15 = vld [vmem:[%s3351_s4 + $0x648] sm:$0xff]  ;;  %v479_v16 = vld [vmem:[%s3351_s4 + $0x618] sm:$0xff] }
  0xb1   : > { %1837 = vmatpush1.bf16.msra.mxu0 %v2958_v28  ;;  %v605_v28 = vpack.c.bf16 %v421_v19, %v413_v18  ;;  %v487_v17 = vld [vmem:[%s3351_s4 + $0x658] sm:$0xff] }
  0xb2   : > { %2030 = vmatpush1.bf16.msra.mxu1 %v2961_v29  ;;  %1838 = vmatprep.subr.bf16.mxu0 %v2966_v30  ;;  %v607_v29 = vpack.c.bf16 %v423_v22, %v415_v20  ;;  %v3002_v30 = vld [vmem:[#allocation5 + $0x294] ss:$8 sps:$4 sm:$0xff]   ;;  %v637_v20 = vpack.c.bf16 %v485_v15, %v477_v14  ;;  %v476_v22 = vld [vmem:[%s3351_s4 + $0x600] sm:$0xff] }
  0xb3   : > { %2031 = vmatprep.subr.bf16.mxu1 %v2969_v31  ;;  %1509 = vmatmul.mubr.bf16.gmra.mxu0 %v572_v32  ;;  %v412_v31 = vld [vmem:[%s3351_s4 + $0x400] sm:$0xff]  ;;  %v3000_v32 = vld [vmem:[#allocation5 + $0x290] ss:$8 sps:$4 sm:$0xff]  }
  0xb4   : > { %1702 = vmatmul.mubr.bf16.gmra.mxu1 %v574_v33  ;;  %1518 = vmatprep.mubr.bf16.mxu0 %v581_v34  ;;  %v3003_v33 = vld [vmem:[#allocation5 + $0x390] ss:$8 sps:$4 sm:$0xff]   ;;  %v3005_v34 = vld [vmem:[#allocation5 + $0x394] ss:$8 sps:$4 sm:$0xff]  }
  0xb5   : > { %1711 = vmatprep.mubr.bf16.mxu1 %v583_v35  ;;  %1839 = vmatpush2.bf16.msra.mxu0 %v2964_v36  ;;  %v420_v35 = vld [vmem:[%s3351_s4 + $0x440] sm:$0xff]  ;;  %v414_v36 = vld [vmem:[%s3351_s4 + $0x410] sm:$0xff] }
  0xb6   : > { %2032 = vmatpush2.bf16.msra.mxu1 %v2967_v37  ;;  %1840 = vmatprep.subr.bf16.mxu0 %v2972_v42  ;;  %v422_v37 = vld [vmem:[%s3351_s4 + $0x450] sm:$0xff]  ;;  %v3006_v42 = vld [vmem:[#allocation5 + $0x280] ss:$8 sps:$4 sm:$0xff]   ;;  %v604_v44 = vpack.c.bf16 %v420_v35, %v412_v31 }
  0xb7   : > { %2033 = vmatprep.subr.bf16.mxu1 %v2975_v43  ;;  %v3008_v43 = vld [vmem:[#allocation5 + $0x284] ss:$8 sps:$4 sm:$0xff]   ;;  %v606_v45 = vpack.c.bf16 %v422_v37, %v414_v36  ;;  %v494_v36 = vld [vmem:[%s3351_s4 + $0x690] sm:$0xff] }
  0xb8   : > { %v500_v35 = vld [vmem:[%s3351_s4 + $0x6c0] sm:$0xff]  ;;  %v502_v37 = vld [vmem:[%s3351_s4 + $0x6d0] sm:$0xff] }
  0xb9   : > { %1841 = vmatpush2.bf16.msra.mxu0 %v2970_v48  ;;  %v613_v48 = vpack.c.bf16 %v437_v39, %v429_v38  ;;  %v509_v38 = vld [vmem:[%s3351_s4 + $0x708] sm:$0xff] }
  0xba   : > { %2034 = vmatpush2.bf16.msra.mxu1 %v2973_v49  ;;  %1842 = vmatprep.subr.bf16.mxu0 %v2978_v50  ;;  %v615_v49 = vpack.c.bf16 %v439_v41, %v431_v40  ;;  %v428_v50 = vld [vmem:[%s3351_s4 + $0x480] sm:$0xff]  ;;  %v517_v39 = vld [vmem:[%s3351_s4 + $0x748] sm:$0xff]  ;;  %v511_v40 = vld [vmem:[%s3351_s4 + $0x718] sm:$0xff] }
  0xbb   : > { %2035 = vmatprep.subr.bf16.mxu1 %v2981_v51  ;;  %1519 = vmatmul.mubr.bf16.gmra.mxu0 %v580_v52  ;;  %v436_v51 = vld [vmem:[%s3351_s4 + $0x4c0] sm:$0xff]  ;;  %v430_v52 = vld [vmem:[%s3351_s4 + $0x490] sm:$0xff]  ;;  %v519_v41 = vld [vmem:[%s3351_s4 + $0x758] sm:$0xff] }
  0xbc   : > { %1712 = vmatmul.mubr.bf16.gmra.mxu1 %v582_v53  ;;  %1528 = vmatprep.mubr.bf16.mxu0 %v589_v54  ;;  %v438_v53 = vld [vmem:[%s3351_s4 + $0x4d0] sm:$0xff]  ;;  %v445_v54 = vld [vmem:[%s3351_s4 + $0x508] sm:$0xff]  ;;  %v612_v58 = vpack.c.bf16 %v436_v51, %v428_v50 }
  0xbd   : > { %1721 = vmatprep.mubr.bf16.mxu1 %v591_v55  ;;  %1843 = vmatpush2.bf16.msra.mxu0 %v2976_v56  ;;  %v453_v55 = vld [vmem:[%s3351_s4 + $0x548] sm:$0xff]  ;;  %v447_v56 = vld [vmem:[%s3351_s4 + $0x518] sm:$0xff]  ;;  %v614_v59 = vpack.c.bf16 %v438_v53, %v430_v52 }
  0xbe   : > { %2036 = vmatpush2.bf16.msra.mxu1 %v2979_v57  ;;  %1844 = vmatprep.subr.bf16.mxu0 %v2984_v61  ;;  %v455_v57 = vld [vmem:[%s3351_s4 + $0x558] sm:$0xff]  ;;  %v621_v60 = vpack.c.bf16 %v453_v55, %v445_v54  ;;  %v525_v50 = vld [vmem:[%s3351_s4 + $0x788] sm:$0xff] }
  0xbf   : > { %2037 = vmatprep.subr.bf16.mxu1 %v2987_v62  ;;  %v623_v61 = vpack.c.bf16 %v455_v57, %v447_v56  ;;  %v444_v62 = vld [vmem:[%s3351_s4 + $0x500] sm:$0xff]  ;;  %v533_v51 = vld [vmem:[%s3351_s4 + $0x7c8] sm:$0xff]  ;;  %v527_v52 = vld [vmem:[%s3351_s4 + $0x798] sm:$0xff] }
  0xc0   : > { %v535_v53 = vld [vmem:[%s3351_s4 + $0x7d8] sm:$0xff]  ;;  %v661_v56 = vpack.c.bf16 %v533_v51, %v525_v50 }
  0xc1   : > { %1845 = vmatpush2.bf16.msra.mxu0 %v2982_v4  ;;  %v463_v4 = vld [vmem:[%s3351_s4 + $0x598] sm:$0xff]  ;;  %v663_v57 = vpack.c.bf16 %v535_v53, %v527_v52 }
  0xc2   : > { %2038 = vmatpush2.bf16.msra.mxu1 %v2985_v5  ;;  %1846 = vmatprep.subr.bf16.mxu0 %v2990_v6  ;;  %v471_v5 = vld [vmem:[%s3351_s4 + $0x5d8] sm:$0xff]  ;;  %v620_v6 = vpack.c.bf16 %v452_v63, %v444_v62  ;;  %v289_v62 = vld [vmem:[%s3351_s4 + $0x28] sm:$0xff] }
  0xc3   : > { %2039 = vmatprep.subr.bf16.mxu1 %v2993_v9  ;;  %1529 = vmatmul.mubr.bf16.gmra.mxu0 %v588_v7  ;;  %v622_v7 = vpack.c.bf16 %v454_v1, %v446_v0  ;;  %v631_v9 = vpack.c.bf16 %v471_v5, %v463_v4  ;;  %v297_v63 = vld [vmem:[%s3351_s4 + $0x68] sm:$0xff]  ;;  %v291_v0 = vld [vmem:[%s3351_s4 + $0x38] sm:$0xff] }
  0xc4   : > { %1722 = vmatmul.mubr.bf16.gmra.mxu1 %v590_v8  ;;  %1538 = vmatprep.mubr.bf16.mxu0 %v597_v10  ;;  %v629_v8 = vpack.c.bf16 %v469_v3, %v461_v2  ;;  %v460_v10 = vld [vmem:[%s3351_s4 + $0x580] sm:$0xff]  ;;  %v299_v1 = vld [vmem:[%s3351_s4 + $0x78] sm:$0xff]  ;;  %v545_v4 = vpack.c.bf16 %v297_v63, %v289_v62 }
  0xc5   : > { %1731 = vmatprep.mubr.bf16.mxu1 %v599_v11  ;;  %1847 = vmatpush2.bf16.msra.mxu0 %v2988_v12  ;;  %v468_v11 = vld [vmem:[%s3351_s4 + $0x5c0] sm:$0xff]  ;;  %v462_v12 = vld [vmem:[%s3351_s4 + $0x590] sm:$0xff]  ;;  %v547_v5 = vpack.c.bf16 %v299_v1, %v291_v0 }
  0xc6   : > { %2040 = vmatpush2.bf16.msra.mxu1 %v2991_v13  ;;  %1848 = vmatprep.subr.bf16.mxu0 %v2996_v21  ;;  %v470_v13 = vld [vmem:[%s3351_s4 + $0x5d0] sm:$0xff]  ;;  %v628_v18 = vpack.c.bf16 %v468_v11, %v460_v10  ;;  %v639_v21 = vpack.c.bf16 %v487_v17, %v479_v16  ;;  %v305_v10 = vld [vmem:[%s3351_s4 + $0xa8] sm:$0xff] }
  0xc7   : > { %2041 = vmatprep.subr.bf16.mxu1 %v2999_v25  ;;  %v630_v19 = vpack.c.bf16 %v470_v13, %v462_v12  ;;  %v486_v25 = vld [vmem:[%s3351_s4 + $0x650] sm:$0xff]  ;;  %v313_v11 = vld [vmem:[%s3351_s4 + $0xe8] sm:$0xff]  ;;  %v307_v12 = vld [vmem:[%s3351_s4 + $0xb8] sm:$0xff] }
  0xc8   : > { %v315_v13 = vld [vmem:[%s3351_s4 + $0xf8] sm:$0xff]  ;;  %v553_v16 = vpack.c.bf16 %v313_v11, %v305_v10 }
  0xc9   : > { %1849 = vmatpush2.bf16.msra.mxu0 %v2994_v23  ;;  %v484_v23 = vld [vmem:[%s3351_s4 + $0x640] sm:$0xff]  ;;  %v555_v17 = vpack.c.bf16 %v315_v13, %v307_v12 }
  0xca   : > { %2042 = vmatpush2.bf16.msra.mxu1 %v2997_v24  ;;  %1850 = vmatprep.subr.bf16.mxu0 %v3002_v30  ;;  %v478_v24 = vld [vmem:[%s3351_s4 + $0x610] sm:$0xff]  ;;  %v636_v30 = vpack.c.bf16 %v484_v23, %v476_v22  ;;  %v321_v22 = vld [vmem:[%s3351_s4 + $0x128] sm:$0xff] }
  0xcb   : > { %1539 = vmatmul.mubr.bf16.gmra.mxu0 %v596_v26  ;;  %2043 = vmatprep.subr.bf16.mxu1 %v3005_v34  ;;  %v493_v26 = vld [vmem:[%s3351_s4 + $0x688] sm:$0xff]  ;;  %v638_v31 = vpack.c.bf16 %v486_v25, %v478_v24  ;;  %v492_v34 = vld [vmem:[%s3351_s4 + $0x680] sm:$0xff]  ;;  %v323_v24 = vld [vmem:[%s3351_s4 + $0x138] sm:$0xff] }
  0xcc   : > { %1732 = vmatmul.mubr.bf16.gmra.mxu1 %v598_v27  ;;  %1548 = vmatprep.mubr.bf16.mxu0 %v605_v28  ;;  %v501_v27 = vld [vmem:[%s3351_s4 + $0x6c8] sm:$0xff]  ;;  %v495_v28 = vld [vmem:[%s3351_s4 + $0x698] sm:$0xff] }
  0xcd   : > { %1741 = vmatprep.mubr.bf16.mxu1 %v607_v29  ;;  %1851 = vmatpush2.bf16.msra.mxu0 %v3000_v32  ;;  %v503_v29 = vld [vmem:[%s3351_s4 + $0x6d8] sm:$0xff]  ;;  %v645_v32 = vpack.c.bf16 %v501_v27, %v493_v26  ;;  %v329_v23 = vld [vmem:[%s3351_s4 + $0x168] sm:$0xff] }
  0xce   : > { %2044 = vmatpush2.bf16.msra.mxu1 %v3003_v33  ;;  %1852 = vmatprep.subr.bf16.mxu0 %v3008_v43  ;;  %v647_v33 = vpack.c.bf16 %v503_v29, %v495_v28  ;;  %v646_v43 = vpack.c.bf16 %v502_v37, %v494_v36  ;;  %v331_v25 = vld [vmem:[%s3351_s4 + $0x178] sm:$0xff]  ;;  %v561_v28 = vpack.c.bf16 %v329_v23, %v321_v22 }
  0xcf   : > { %2045 = vmatprep.subr.bf16.mxu1 %v3011_v47  ;;  %v516_v47 = vld [vmem:[%s3351_s4 + $0x740] sm:$0xff]  ;;  %v563_v29 = vpack.c.bf16 %v331_v25, %v323_v24  ;;  %v339_v36 = vld [vmem:[%s3351_s4 + $0x1b8] sm:$0xff] }
  0xd0   : > { %v347_v37 = vld [vmem:[%s3351_s4 + $0x1f8] sm:$0xff] }
  0xd1   : > { %1853 = vmatpush2.bf16.msra.mxu0 %v3006_v42  ;;  %v644_v42 = vpack.c.bf16 %v500_v35, %v492_v34  ;;  %v337_v34 = vld [vmem:[%s3351_s4 + $0x1a8] sm:$0xff] }
  0xd2   : > { %2046 = vmatpush2.bf16.msra.mxu1 %v3009_v46  ;;  %v508_v46 = vld [vmem:[%s3351_s4 + $0x700] sm:$0xff]  ;;  %v345_v35 = vld [vmem:[%s3351_s4 + $0x1e8] sm:$0xff] }
  0xd3   : > { %1549 = vmatmul.mubr.bf16.gmra.mxu0 %v604_v44  ;;  %v653_v44 = vpack.c.bf16 %v517_v39, %v509_v38  ;;  %v652_v54 = vpack.c.bf16 %v516_v47, %v508_v46  ;;  %v353_v46 = vld [vmem:[%s3351_s4 + $0x228] sm:$0xff] }
  0xd4   : > { %1742 = vmatmul.mubr.bf16.gmra.mxu1 %v606_v45  ;;  %1558 = vmatprep.mubr.bf16.mxu0 %v613_v48  ;;  %v655_v45 = vpack.c.bf16 %v519_v41, %v511_v40  ;;  %v510_v48 = vld [vmem:[%s3351_s4 + $0x710] sm:$0xff]  ;;  %v569_v40 = vpack.c.bf16 %v345_v35, %v337_v34  ;;  %v571_v41 = vpack.c.bf16 %v347_v37, %v339_v36  ;;  %v361_v47 = vld [vmem:[%s3351_s4 + $0x268] sm:$0xff] }
  0xd5   : > { %1751 = vmatprep.mubr.bf16.mxu1 %v615_v49  ;;  %v518_v49 = vld [vmem:[%s3351_s4 + $0x750] sm:$0xff]  ;;  %v577_v52 = vpack.c.bf16 %v361_v47, %v353_v46 }
  0xd6   : > { %v654_v55 = vpack.c.bf16 %v518_v49, %v510_v48  ;;  %v355_v48 = vld [vmem:[%s3351_s4 + $0x238] sm:$0xff] }
  0xd7   : > { %v363_v49 = vld [vmem:[%s3351_s4 + $0x278] sm:$0xff] }
  0xd8   : > { %v579_v53 = vpack.c.bf16 %v363_v49, %v355_v48 }
  0xdb   : > { %1559 = vmatmul.mubr.bf16.gmra.mxu0 %v612_v58  ;;  %v524_v58 = vld [vmem:[%s3351_s4 + $0x780] sm:$0xff] }
  0xdc   : > { %1752 = vmatmul.mubr.bf16.gmra.mxu1 %v614_v59  ;;  %1568 = vmatprep.mubr.bf16.mxu0 %v621_v60  ;;  %v532_v59 = vld [vmem:[%s3351_s4 + $0x7c0] sm:$0xff]  ;;  %v526_v60 = vld [vmem:[%s3351_s4 + $0x790] sm:$0xff] }
  0xdd   : > { %1761 = vmatprep.mubr.bf16.mxu1 %v623_v61  ;;  %v534_v61 = vld [vmem:[%s3351_s4 + $0x7d0] sm:$0xff]  ;;  %v660_v2 = vpack.c.bf16 %v532_v59, %v524_v58  ;;  %v369_v58 = vld [vmem:[%s3351_s4 + $0x2a8] sm:$0xff] }
  0xde   : > { %v662_v3 = vpack.c.bf16 %v534_v61, %v526_v60  ;;  %v377_v59 = vld [vmem:[%s3351_s4 + $0x2e8] sm:$0xff]  ;;  %v371_v60 = vld [vmem:[%s3351_s4 + $0x2b8] sm:$0xff] }
  0xdf   : > { %v379_v61 = vld [vmem:[%s3351_s4 + $0x2f8] sm:$0xff]  ;;  %v585_v0 = vpack.c.bf16 %v377_v59, %v369_v58 }
  0xe0   : > { %v587_v1 = vpack.c.bf16 %v379_v61, %v371_v60  ;;  %v457_v60 = vld [vmem:[%s3351_s4 + $0x568] sm:$0xff]  ;;  %v451_v61 = vld [vmem:[%s3351_s4 + $0x538] sm:$0xff] }
  0xe3   : > { %1569 = vmatmul.mubr.bf16.gmra.mxu0 %v620_v6  ;;  %v288_v6 = vld [vmem:[%s3351_s4 + $0x20] sm:$0xff] }
  0xe4   : > { %1762 = vmatmul.mubr.bf16.gmra.mxu1 %v622_v7  ;;  %1578 = vmatprep.mubr.bf16.mxu0 %v629_v8  ;;  %v296_v7 = vld [vmem:[%s3351_s4 + $0x60] sm:$0xff]  ;;  %v290_v8 = vld [vmem:[%s3351_s4 + $0x30] sm:$0xff] }
  0xe5   : > { %1771 = vmatprep.mubr.bf16.mxu1 %v631_v9  ;;  %v298_v9 = vld [vmem:[%s3351_s4 + $0x70] sm:$0xff]  ;;  %v544_v14 = vpack.c.bf16 %v296_v7, %v288_v6  ;;  %v385_v6 = vld [vmem:[%s3351_s4 + $0x328] sm:$0xff] }
  0xe6   : > { %v546_v15 = vpack.c.bf16 %v298_v9, %v290_v8  ;;  %v393_v7 = vld [vmem:[%s3351_s4 + $0x368] sm:$0xff]  ;;  %v387_v8 = vld [vmem:[%s3351_s4 + $0x338] sm:$0xff] }
  0xe7   : > { %v395_v9 = vld [vmem:[%s3351_s4 + $0x378] sm:$0xff]  ;;  %v593_v12 = vpack.c.bf16 %v393_v7, %v385_v6 }
  0xe8   : > { %v595_v13 = vpack.c.bf16 %v395_v9, %v387_v8 }
  0xeb   : > { %1579 = vmatmul.mubr.bf16.gmra.mxu0 %v628_v18  ;;  %v304_v18 = vld [vmem:[%s3351_s4 + $0xa0] sm:$0xff] }
  0xec   : > { %1772 = vmatmul.mubr.bf16.gmra.mxu1 %v630_v19  ;;  %1588 = vmatprep.mubr.bf16.mxu0 %v637_v20  ;;  %v312_v19 = vld [vmem:[%s3351_s4 + $0xe0] sm:$0xff]  ;;  %v306_v20 = vld [vmem:[%s3351_s4 + $0xb0] sm:$0xff] }
  0xed   : > { %1781 = vmatprep.mubr.bf16.mxu1 %v639_v21  ;;  %v314_v21 = vld [vmem:[%s3351_s4 + $0xf0] sm:$0xff]  ;;  %v552_v26 = vpack.c.bf16 %v312_v19, %v304_v18  ;;  %v401_v18 = vld [vmem:[%s3351_s4 + $0x3a8] sm:$0xff] }
  0xee   : > { %v554_v27 = vpack.c.bf16 %v314_v21, %v306_v20  ;;  %v409_v19 = vld [vmem:[%s3351_s4 + $0x3e8] sm:$0xff]  ;;  %v403_v20 = vld [vmem:[%s3351_s4 + $0x3b8] sm:$0xff] }
  0xef   : > { %v411_v21 = vld [vmem:[%s3351_s4 + $0x3f8] sm:$0xff]  ;;  %v601_v24 = vpack.c.bf16 %v409_v19, %v401_v18 }
  0xf0   : > { %v603_v25 = vpack.c.bf16 %v411_v21, %v403_v20  ;;  %v473_v20 = vld [vmem:[%s3351_s4 + $0x5e8] sm:$0xff]  ;;  %v467_v21 = vld [vmem:[%s3351_s4 + $0x5b8] sm:$0xff] }
  0xf3   : > { %1589 = vmatmul.mubr.bf16.gmra.mxu0 %v636_v30  ;;  %v320_v30 = vld [vmem:[%s3351_s4 + $0x120] sm:$0xff] }
  0xf4   : > { %1782 = vmatmul.mubr.bf16.gmra.mxu1 %v638_v31  ;;  %1598 = vmatprep.mubr.bf16.mxu0 %v645_v32  ;;  %v328_v31 = vld [vmem:[%s3351_s4 + $0x160] sm:$0xff]  ;;  %v322_v32 = vld [vmem:[%s3351_s4 + $0x130] sm:$0xff] }
  0xf5   : > { %1791 = vmatprep.mubr.bf16.mxu1 %v647_v33  ;;  %v330_v33 = vld [vmem:[%s3351_s4 + $0x170] sm:$0xff]  ;;  %v560_v38 = vpack.c.bf16 %v328_v31, %v320_v30  ;;  %v417_v30 = vld [vmem:[%s3351_s4 + $0x428] sm:$0xff] }
  0xf6   : > { %v562_v39 = vpack.c.bf16 %v330_v33, %v322_v32  ;;  %v425_v31 = vld [vmem:[%s3351_s4 + $0x468] sm:$0xff]  ;;  %v419_v32 = vld [vmem:[%s3351_s4 + $0x438] sm:$0xff] }
  0xf7   : > { %v427_v33 = vld [vmem:[%s3351_s4 + $0x478] sm:$0xff]  ;;  %v609_v36 = vpack.c.bf16 %v425_v31, %v417_v30 }
  0xf8   : > { %v611_v37 = vpack.c.bf16 %v427_v33, %v419_v32 }
  0xfb   : > { %1599 = vmatmul.mubr.bf16.gmra.mxu0 %v644_v42  ;;  %v336_v42 = vld [vmem:[%s3351_s4 + $0x1a0] sm:$0xff] }
  0xfc   : > { %1792 = vmatmul.mubr.bf16.gmra.mxu1 %v646_v43  ;;  %1608 = vmatprep.mubr.bf16.mxu0 %v653_v44  ;;  %v344_v43 = vld [vmem:[%s3351_s4 + $0x1e0] sm:$0xff]  ;;  %v338_v44 = vld [vmem:[%s3351_s4 + $0x1b0] sm:$0xff] }
  0xfd   : > { %1801 = vmatprep.mubr.bf16.mxu1 %v655_v45  ;;  %v346_v45 = vld [vmem:[%s3351_s4 + $0x1f0] sm:$0xff]  ;;  %v568_v50 = vpack.c.bf16 %v344_v43, %v336_v42  ;;  %v433_v42 = vld [vmem:[%s3351_s4 + $0x4a8] sm:$0xff] }
  0xfe   : > { %v570_v51 = vpack.c.bf16 %v346_v45, %v338_v44  ;;  %v441_v43 = vld [vmem:[%s3351_s4 + $0x4e8] sm:$0xff]  ;;  %v435_v44 = vld [vmem:[%s3351_s4 + $0x4b8] sm:$0xff] }
  0xff   : > { %v443_v45 = vld [vmem:[%s3351_s4 + $0x4f8] sm:$0xff]  ;;  %v617_v48 = vpack.c.bf16 %v441_v43, %v433_v42 }
 0x100   : > { %v619_v49 = vpack.c.bf16 %v443_v45, %v435_v44  ;;  %v489_v44 = vld [vmem:[%s3351_s4 + $0x668] sm:$0xff]  ;;  %v483_v45 = vld [vmem:[%s3351_s4 + $0x638] sm:$0xff] }
 0x103   : > { %1609 = vmatmul.mubr.bf16.gmra.mxu0 %v652_v54  ;;  %v352_v54 = vld [vmem:[%s3351_s4 + $0x220] sm:$0xff] }
 0x104   : > { %1802 = vmatmul.mubr.bf16.gmra.mxu1 %v654_v55  ;;  %1618 = vmatprep.mubr.bf16.mxu0 %v661_v56  ;;  %v360_v55 = vld [vmem:[%s3351_s4 + $0x260] sm:$0xff]  ;;  %v354_v56 = vld [vmem:[%s3351_s4 + $0x230] sm:$0xff] }
 0x105   : > { %1811 = vmatprep.mubr.bf16.mxu1 %v663_v57  ;;  %v362_v57 = vld [vmem:[%s3351_s4 + $0x270] sm:$0xff]  ;;  %v576_v62 = vpack.c.bf16 %v360_v55, %v352_v54 }
 0x106   : > { %v578_v63 = vpack.c.bf16 %v362_v57, %v354_v56  ;;  %v434_v55 = vld [vmem:[%s3351_s4 + $0x4b0] sm:$0xff]  ;;  %v449_v57 = vld [vmem:[%s3351_s4 + $0x528] sm:$0xff] }
 0x107   : > { %v442_v56 = vld [vmem:[%s3351_s4 + $0x4f0] sm:$0xff] }
 0x10b   : > { %1619 = vmatmul.mubr.bf16.gmra.mxu0 %v660_v2  ;;  %v368_v2 = vld [vmem:[%s3351_s4 + $0x2a0] sm:$0xff] }
 0x10c   : > { %1812 = vmatmul.mubr.bf16.gmra.mxu1 %v662_v3  ;;  %1854 = vmatprep.mubr.bf16.mxu0 %v545_v4  ;;  %v376_v3 = vld [vmem:[%s3351_s4 + $0x2e0] sm:$0xff]  ;;  %v370_v4 = vld [vmem:[%s3351_s4 + $0x2b0] sm:$0xff] }
 0x10d   : > { %2047 = vmatprep.mubr.bf16.mxu1 %v547_v5  ;;  %v378_v5 = vld [vmem:[%s3351_s4 + $0x2f0] sm:$0xff]  ;;  %v584_v10 = vpack.c.bf16 %v376_v3, %v368_v2  ;;  %v618_v3 = vpack.c.bf16 %v442_v56, %v434_v55 }
 0x10e   : > { %v586_v11 = vpack.c.bf16 %v378_v5, %v370_v4  ;;  %v625_v5 = vpack.c.bf16 %v457_v60, %v449_v57 }
 0x113   : > { %1855 = vmatmul.mubr.bf16.vlgmr.msra.gmra.mxu0 %v544_v14  ;;  %v384_v14 = vld [vmem:[%s3351_s4 + $0x320] sm:$0xff] }
 0x114   : > { %2048 = vmatmul.mubr.bf16.vlgmr.msra.gmra.mxu1 %v546_v15  ;;  %1864 = vmatprep.mubr.bf16.mxu0 %v553_v16  ;;  %v392_v15 = vld [vmem:[%s3351_s4 + $0x360] sm:$0xff]  ;;  %v386_v16 = vld [vmem:[%s3351_s4 + $0x330] sm:$0xff] }
 0x115   : > { %2057 = vmatprep.mubr.bf16.mxu1 %v555_v17  ;;  %v394_v17 = vld [vmem:[%s3351_s4 + $0x370] sm:$0xff]  ;;  %v592_v22 = vpack.c.bf16 %v392_v15, %v384_v14 }
 0x116   : > { %v594_v23 = vpack.c.bf16 %v394_v17, %v386_v16  ;;  %v450_v15 = vld [vmem:[%s3351_s4 + $0x530] sm:$0xff]  ;;  %v465_v17 = vld [vmem:[%s3351_s4 + $0x5a8] sm:$0xff] }
 0x117   : > { %v458_v16 = vld [vmem:[%s3351_s4 + $0x570] sm:$0xff] }
 0x11b   : > { %1865 = vmatmul.mubr.bf16.gmra.mxu0 %v552_v26  ;;  %v400_v26 = vld [vmem:[%s3351_s4 + $0x3a0] sm:$0xff] }
 0x11c   : > { %2058 = vmatmul.mubr.bf16.gmra.mxu1 %v554_v27  ;;  %1874 = vmatprep.mubr.bf16.mxu0 %v561_v28  ;;  %v408_v27 = vld [vmem:[%s3351_s4 + $0x3e0] sm:$0xff]  ;;  %v402_v28 = vld [vmem:[%s3351_s4 + $0x3b0] sm:$0xff] }
 0x11d   : > { %2067 = vmatprep.mubr.bf16.mxu1 %v563_v29  ;;  %v410_v29 = vld [vmem:[%s3351_s4 + $0x3f0] sm:$0xff]  ;;  %v600_v34 = vpack.c.bf16 %v408_v27, %v400_v26  ;;  %v626_v27 = vpack.c.bf16 %v458_v16, %v450_v15 }
 0x11e   : > { %v602_v35 = vpack.c.bf16 %v410_v29, %v402_v28  ;;  %v633_v29 = vpack.c.bf16 %v473_v20, %v465_v17 }
 0x123   : > { %1875 = vmatmul.mubr.bf16.gmra.mxu0 %v560_v38  ;;  %v416_v38 = vld [vmem:[%s3351_s4 + $0x420] sm:$0xff] }
 0x124   : > { %2068 = vmatmul.mubr.bf16.gmra.mxu1 %v562_v39  ;;  %1884 = vmatprep.mubr.bf16.mxu0 %v569_v40  ;;  %v424_v39 = vld [vmem:[%s3351_s4 + $0x460] sm:$0xff]  ;;  %v418_v40 = vld [vmem:[%s3351_s4 + $0x430] sm:$0xff] }
 0x125   : > { %2077 = vmatprep.mubr.bf16.mxu1 %v571_v41  ;;  %v426_v41 = vld [vmem:[%s3351_s4 + $0x470] sm:$0xff]  ;;  %v608_v46 = vpack.c.bf16 %v424_v39, %v416_v38 }
 0x126   : > { %v610_v47 = vpack.c.bf16 %v426_v41, %v418_v40  ;;  %v466_v39 = vld [vmem:[%s3351_s4 + $0x5b0] sm:$0xff]  ;;  %v481_v41 = vld [vmem:[%s3351_s4 + $0x628] sm:$0xff] }
 0x127   : > { %v474_v40 = vld [vmem:[%s3351_s4 + $0x5f0] sm:$0xff] }
 0x12b   : > { %1885 = vmatmul.mubr.bf16.gmra.mxu0 %v568_v50 }
 0x12c   : > { %2078 = vmatmul.mubr.bf16.gmra.mxu1 %v570_v51  ;;  %1894 = vmatprep.mubr.bf16.mxu0 %v577_v52  ;;  %v432_v52 = vld [vmem:[%s3351_s4 + $0x4a0] sm:$0xff] }
 0x12d   : > { %2087 = vmatprep.mubr.bf16.mxu1 %v579_v53  ;;  %v440_v53 = vld [vmem:[%s3351_s4 + $0x4e0] sm:$0xff] }
 0x12e   : > { %v616_v2 = vpack.c.bf16 %v440_v53, %v432_v52  ;;  %v641_v53 = vpack.c.bf16 %v489_v44, %v481_v41 }
 0x133   : > { %1895 = vmatmul.mubr.bf16.gmra.mxu0 %v576_v62  ;;  %v459_v62 = vld [vmem:[%s3351_s4 + $0x578] sm:$0xff] }
 0x134   : > { %2088 = vmatmul.mubr.bf16.gmra.mxu1 %v578_v63  ;;  %1904 = vmatprep.mubr.bf16.mxu0 %v585_v0  ;;  %v627_v6 = vpack.c.bf16 %v459_v62, %v451_v61  ;;  %v480_v61 = vld [vmem:[%s3351_s4 + $0x620] sm:$0xff] }
 0x135   : > { %2097 = vmatprep.mubr.bf16.mxu1 %v587_v1  ;;  %v488_v62 = vld [vmem:[%s3351_s4 + $0x660] sm:$0xff] }
 0x136   : > { %v640_v15 = vpack.c.bf16 %v488_v62, %v480_v61  ;;  %v522_v61 = vld [vmem:[%s3351_s4 + $0x770] sm:$0xff]  ;;  %v529_v62 = vld [vmem:[%s3351_s4 + $0x7a8] sm:$0xff] }
 0x13b   : > { %1905 = vmatmul.mubr.bf16.gmra.mxu0 %v584_v10 }
 0x13c   : > { %2098 = vmatmul.mubr.bf16.gmra.mxu1 %v586_v11  ;;  %1914 = vmatprep.mubr.bf16.mxu0 %v593_v12  ;;  %v448_v12 = vld [vmem:[%s3351_s4 + $0x520] sm:$0xff] }
 0x13d   : > { %2107 = vmatprep.mubr.bf16.mxu1 %v595_v13  ;;  %v456_v13 = vld [vmem:[%s3351_s4 + $0x560] sm:$0xff] }
 0x13e   : > { %v624_v26 = vpack.c.bf16 %v456_v13, %v448_v12 }
 0x143   : > { %1915 = vmatmul.mubr.bf16.gmra.mxu0 %v592_v22  ;;  %v475_v22 = vld [vmem:[%s3351_s4 + $0x5f8] sm:$0xff] }
 0x144   : > { %2108 = vmatmul.mubr.bf16.gmra.mxu1 %v594_v23  ;;  %1924 = vmatprep.mubr.bf16.mxu0 %v601_v24  ;;  %v635_v30 = vpack.c.bf16 %v475_v22, %v467_v21 }
 0x145   : > { %2117 = vmatprep.mubr.bf16.mxu1 %v603_v25 }
 0x14b   : > { %1925 = vmatmul.mubr.bf16.gmra.mxu0 %v600_v34 }
 0x14c   : > { %2118 = vmatmul.mubr.bf16.gmra.mxu1 %v602_v35  ;;  %1934 = vmatprep.mubr.bf16.mxu0 %v609_v36  ;;  %v464_v36 = vld [vmem:[%s3351_s4 + $0x5a0] sm:$0xff] }
 0x14d   : > { %2127 = vmatprep.mubr.bf16.mxu1 %v611_v37  ;;  %v472_v37 = vld [vmem:[%s3351_s4 + $0x5e0] sm:$0xff] }
 0x153   : > { %v1470_v50 = vpop.f32.mrf.mxu0  ;;  %1935 = vmatmul.mubr.bf16.gmra.mxu0 %v608_v46  ;;  %v491_v46 = vld [vmem:[%s3351_s4 + $0x678] sm:$0xff] }
 0x154   : > { %v1663_v51 = vpop.f32.mrf.mxu1  ;;  %2128 = vmatmul.mubr.bf16.gmra.mxu1 %v610_v47  ;;  %1944 = vmatprep.mubr.bf16.mxu0 %v617_v48  ;;  %v643_v55 = vpack.c.bf16 %v491_v46, %v483_v45 }
 0x155   : > { %v3574_v54 = vadd.f32 %v1663_v51, %v1470_v50  ;;  %2137 = vmatprep.mubr.bf16.mxu1 %v619_v49  ;;  %v1472_v58 = vpop.f32.mrf.mxu0  ;;  %v632_v50 = vpack.c.bf16 %v472_v37, %v464_v36  ;;  %v634_v51 = vpack.c.bf16 %v474_v40, %v466_v39  ;;  %v521_v36 = vld [vmem:[%s3351_s4 + $0x768] sm:$0xff]  ;;  %v515_v37 = vld [vmem:[%s3351_s4 + $0x738] sm:$0xff] }
 0x156   : > { %v1665_v59 = vpop.f32.mrf.mxu1  ;;  %v523_v39 = vld [vmem:[%s3351_s4 + $0x778] sm:$0xff] }
 0x157   : > { %v3582_v63 = vadd.f32 %v1665_v59, %v1472_v58  ;;  %v1474_v0 = vpop.f32.mrf.mxu0 }
 0x158   : > { %v1667_v1 = vpop.f32.mrf.mxu1 }
 0x159   : > { %v3584_v4 = vadd.f32 %v1667_v1, %v1474_v0  ;;  %v1476_v7 = vpop.f32.mrf.mxu0  ;;  %v482_v1 = vld [vmem:[%s3351_s4 + $0x630] sm:$0xff] }
 0x15a   : > { %v1669_v8 = vpop.f32.mrf.mxu1 }
 0x15b   : > { %v3586_v9 = vadd.f32 %v1669_v8, %v1476_v7  ;;  %v1480_v10 = vpop.f32.mrf.mxu0  ;;  %1945 = vmatmul.mubr.bf16.gmra.mxu0 %v616_v2  ;;  %v490_v2 = vld [vmem:[%s3351_s4 + $0x670] sm:$0xff]  ;;  %v505_v7 = vld [vmem:[%s3351_s4 + $0x6e8] sm:$0xff]  ;;  %v499_v8 = vld [vmem:[%s3351_s4 + $0x6b8] sm:$0xff] }
 0x15c   : > { %v1673_v11 = vpop.f32.mrf.mxu1  ;;  %2138 = vmatmul.mubr.bf16.gmra.mxu1 %v618_v3  ;;  %1954 = vmatprep.mubr.bf16.mxu0 %v625_v5  ;;  %v497_v3 = vld [vmem:[%s3351_s4 + $0x6a8] sm:$0xff]  ;;  %v642_v16 = vpack.c.bf16 %v490_v2, %v482_v1 }
 0x15d   : > { %v3590_v14 = vadd.f32 %v1673_v11, %v1480_v10  ;;  %2147 = vmatprep.mubr.bf16.mxu1 %v627_v6  ;;  %v1482_v18 = vpop.f32.mrf.mxu0  ;;  %v507_v10 = vld [vmem:[%s3351_s4 + $0x6f8] sm:$0xff] }
 0x15e   : > { %v1675_v19 = vpop.f32.mrf.mxu1 }
 0x15f   : > { %v3598_v23 = vadd.f32 %v1675_v19, %v1482_v18  ;;  %v1484_v24 = vpop.f32.mrf.mxu0  ;;  %v649_v18 = vpack.c.bf16 %v505_v7, %v497_v3  ;;  %v651_v19 = vpack.c.bf16 %v507_v10, %v499_v8  ;;  %v537_v3 = vld [vmem:[%s3351_s4 + $0x7e8] sm:$0xff] }
 0x160   : > { %v1677_v25 = vpop.f32.mrf.mxu1 }
 0x161   : > { %v3600_v28 = vadd.f32 %v1677_v25, %v1484_v24  ;;  %v1486_v31 = vpop.f32.mrf.mxu0 }
 0x162   : > { %v1679_v32 = vpop.f32.mrf.mxu1 }
 0x163   : > { %v3602_v33 = vadd.f32 %v1679_v32, %v1486_v31  ;;  %v1490_v34 = vpop.f32.mrf.mxu0  ;;  %1955 = vmatmul.mubr.bf16.gmra.mxu0 %v624_v26  ;;  %v496_v26 = vld [vmem:[%s3351_s4 + $0x6a0] sm:$0xff]  ;;  %v506_v31 = vld [vmem:[%s3351_s4 + $0x6f0] sm:$0xff]  ;;  %v513_v32 = vld [vmem:[%s3351_s4 + $0x728] sm:$0xff] }
 0x164   : > { %v1683_v35 = vpop.f32.mrf.mxu1  ;;  %2148 = vmatmul.mubr.bf16.gmra.mxu1 %v626_v27  ;;  %1964 = vmatprep.mubr.bf16.mxu0 %v633_v29  ;;  %v504_v27 = vld [vmem:[%s3351_s4 + $0x6e0] sm:$0xff]  ;;  %v657_v46 = vpack.c.bf16 %v521_v36, %v513_v32  ;;  %v538_v32 = vld [vmem:[%s3351_s4 + $0x7f0] sm:$0xff] }
 0x165   : > { %v3606_v38 = vadd.f32 %v1683_v35, %v1490_v34  ;;  %2157 = vmatprep.mubr.bf16.mxu1 %v635_v30  ;;  %v1492_v42 = vpop.f32.mrf.mxu0  ;;  %v498_v30 = vld [vmem:[%s3351_s4 + $0x6b0] sm:$0xff] }
 0x166   : > { %v1685_v43 = vpop.f32.mrf.mxu1  ;;  %v650_v44 = vpack.c.bf16 %v506_v31, %v498_v30  ;;  %v536_v30 = vld [vmem:[%s3351_s4 + $0x7e0] sm:$0xff]  ;;  %v530_v31 = vld [vmem:[%s3351_s4 + $0x7b0] sm:$0xff] }
 0x167   : > { %v3614_v47 = vadd.f32 %v1685_v43, %v1492_v42  ;;  %v1494_v48 = vpop.f32.mrf.mxu0  ;;  %v648_v43 = vpack.c.bf16 %v504_v27, %v496_v26  ;;  %v528_v26 = vld [vmem:[%s3351_s4 + $0x7a0] sm:$0xff] }
 0x168   : > { %v1687_v49 = vpop.f32.mrf.mxu1 }
 0x169   : > { %v3616_v52 = vadd.f32 %v1687_v49, %v1494_v48  ;;  %v1496_v56 = vpop.f32.mrf.mxu0  ;;  %v659_v48 = vpack.c.bf16 %v523_v39, %v515_v37 }
 0x16a   : > { %v1689_v57 = vpop.f32.mrf.mxu1 }
 0x16b   : > { %v3618_v58 = vadd.f32 %v1689_v57, %v1496_v56  ;;  %v1500_v59 = vpop.f32.mrf.mxu0  ;;  %1965 = vmatmul.mubr.bf16.gmra.mxu0 %v632_v50  ;;  %v512_v56 = vld [vmem:[%s3351_s4 + $0x720] sm:$0xff] }
 0x16c   : > { %v1693_v60 = vpop.f32.mrf.mxu1  ;;  %2158 = vmatmul.mubr.bf16.gmra.mxu1 %v634_v51  ;;  %1974 = vmatprep.mubr.bf16.mxu0 %v641_v53  ;;  %v520_v57 = vld [vmem:[%s3351_s4 + $0x760] sm:$0xff] }
 0x16d   : > { %v3622_v0 = vadd.f32 %v1693_v60, %v1500_v59  ;;  %2167 = vmatprep.mubr.bf16.mxu1 %v643_v55  ;;  %v1502_v5 = vpop.f32.mrf.mxu0  ;;  %v514_v60 = vld [vmem:[%s3351_s4 + $0x730] sm:$0xff] }
 0x16e   : > { %v1695_v6 = vpop.f32.mrf.mxu1 }
 0x16f   : > { %v3630_v11 = vadd.f32 %v1695_v6, %v1502_v5  ;;  %v1504_v12 = vpop.f32.mrf.mxu0  ;;  %v531_v5 = vld [vmem:[%s3351_s4 + $0x7b8] sm:$0xff] }
 0x170   : > { %v1697_v13 = vpop.f32.mrf.mxu1  ;;  %v539_v6 = vld [vmem:[%s3351_s4 + $0x7f8] sm:$0xff] }
 0x171   : > { %v3632_v17 = vadd.f32 %v1697_v13, %v1504_v12  ;;  %v1506_v20 = vpop.f32.mrf.mxu0  ;;  %v656_v12 = vpack.c.bf16 %v520_v57, %v512_v56  ;;  %v658_v13 = vpack.c.bf16 %v522_v61, %v514_v60 }
 0x172   : > { %v1699_v21 = vpop.f32.mrf.mxu1 }
 0x173   : > { %v3634_v22 = vadd.f32 %v1699_v21, %v1506_v20  ;;  %v1510_v24 = vpop.f32.mrf.mxu0  ;;  %1975 = vmatmul.mubr.bf16.gmra.mxu0 %v640_v15 }
 0x174   : > { %v1703_v25 = vpop.f32.mrf.mxu1  ;;  %2168 = vmatmul.mubr.bf16.gmra.mxu1 %v642_v16  ;;  %1984 = vmatprep.mubr.bf16.mxu0 %v649_v18  ;;  %v665_v16 = vpack.c.bf16 %v537_v3, %v529_v62  ;;  %v667_v18 = vpack.c.bf16 %v539_v6, %v531_v5 }
 0x175   : > { %v3638_v29 = vadd.f32 %v1703_v25, %v1510_v24  ;;  %2177 = vmatprep.mubr.bf16.mxu1 %v651_v19  ;;  %v1512_v34 = vpop.f32.mrf.mxu0 }
 0x176   : > { %v1705_v35 = vpop.f32.mrf.mxu1 }
 0x177   : > { %v3646_v40 = vadd.f32 %v1705_v35, %v1512_v34  ;;  %v1514_v41 = vpop.f32.mrf.mxu0 }
 0x178   : > { %v1707_v42 = vpop.f32.mrf.mxu1 }
 0x179   : > { %v3648_v45 = vadd.f32 %v1707_v42, %v1514_v41  ;;  %v1516_v49 = vpop.f32.mrf.mxu0  ;;  %v664_v41 = vpack.c.bf16 %v536_v30, %v528_v26  ;;  %v666_v42 = vpack.c.bf16 %v538_v32, %v530_v31 }
 0x17a   : > { %v1709_v50 = vpop.f32.mrf.mxu1 }
 0x17b   : > { %v3650_v51 = vadd.f32 %v1709_v50, %v1516_v49  ;;  %v1520_v53 = vpop.f32.mrf.mxu0  ;;  %1985 = vmatmul.mubr.bf16.gmra.mxu0 %v648_v43 }
 0x17c   : > { %v1713_v55 = vpop.f32.mrf.mxu1  ;;  %2178 = vmatmul.mubr.bf16.gmra.mxu1 %v650_v44  ;;  %1994 = vmatprep.mubr.bf16.mxu0 %v657_v46 }
 0x17d   : > { %v3654_v59 = vadd.f32 %v1713_v55, %v1520_v53  ;;  %2187 = vmatprep.mubr.bf16.mxu1 %v659_v48  ;;  %v1522_v1 = vpop.f32.mrf.mxu0 }
 0x17e   : > { %v1715_v2 = vpop.f32.mrf.mxu1 }
 0x17f   : > { %v3662_v7 = vadd.f32 %v1715_v2, %v1522_v1  ;;  %v1524_v8 = vpop.f32.mrf.mxu0 }
 0x180   : > { %v1717_v10 = vpop.f32.mrf.mxu1 }
 0x181   : > { %v3664_v15 = vadd.f32 %v1717_v10, %v1524_v8  ;;  %v1526_v19 = vpop.f32.mrf.mxu0 }
 0x182   : > { %v1719_v20 = vpop.f32.mrf.mxu1 }
 0x183   : > { %v3666_v21 = vadd.f32 %v1719_v20, %v1526_v19  ;;  %v1530_v24 = vpop.f32.mrf.mxu0  ;;  %1995 = vmatmul.mubr.bf16.gmra.mxu0 %v656_v12 }
 0x184   : > { %v1723_v25 = vpop.f32.mrf.mxu1  ;;  %2188 = vmatmul.mubr.bf16.gmra.mxu1 %v658_v13  ;;  %2004 = vmatprep.mubr.bf16.mxu0 %v665_v16 }
 0x185   : > { %v3669_v27 = vadd.f32 %v1723_v25, %v1530_v24  ;;  %2197 = vmatprep.mubr.bf16.mxu1 %v667_v18  ;;  %v1532_v34 = vpop.f32.mrf.mxu0 }
 0x186   : > { %v1725_v35 = vpop.f32.mrf.mxu1 }
 0x187   : > { %v3674_v36 = vadd.f32 %v1725_v35, %v1532_v34  ;;  %v1534_v37 = vpop.f32.mrf.mxu0 }
 0x188   : > { %v1727_v39 = vpop.f32.mrf.mxu1 }
 0x189   : > { %v3676_v43 = vadd.f32 %v1727_v39, %v1534_v37  ;;  %v1536_v44 = vpop.f32.mrf.mxu0 }
 0x18a   : > { %v1729_v46 = vpop.f32.mrf.mxu1 }
 0x18b   : > { %v3678_v48 = vadd.f32 %v1729_v46, %v1536_v44  ;;  %v1540_v49 = vpop.f32.mrf.mxu0  ;;  %2005 = vmatmul.mubr.bf16.gmra.mxu0 %v664_v41 }
 0x18c   : > { %v1733_v50 = vpop.f32.mrf.mxu1  ;;  %2198 = vmatmul.mubr.bf16.gmra.mxu1 %v666_v42 }
 0x18d   : > { %v3680_v53 = vadd.f32 %v1733_v50, %v1540_v49  ;;  %v1542_v55 = vpop.f32.mrf.mxu0 }
 0x18e   : > { %v1735_v56 = vpop.f32.mrf.mxu1 }
 0x18f   : > { %v3682_v57 = vadd.f32 %v1735_v56, %v1542_v55  ;;  %v1544_v60 = vpop.f32.mrf.mxu0 }
 0x190   : > { %v1737_v61 = vpop.f32.mrf.mxu1 }
 0x191   : > { %v3684_v62 = vadd.f32 %v1737_v61, %v1544_v60  ;;  %v1546_v1 = vpop.f32.mrf.mxu0 }
 0x192   : > { %v1739_v2 = vpop.f32.mrf.mxu1 }
 0x193   : > { %v3686_v3 = vadd.f32 %v1739_v2, %v1546_v1  ;;  %v1550_v5 = vpop.f32.mrf.mxu0 }
 0x194   : > { %v1743_v6 = vpop.f32.mrf.mxu1 }
 0x195   : > { %v3688_v8 = vadd.f32 %v1743_v6, %v1550_v5  ;;  %v1552_v10 = vpop.f32.mrf.mxu0 }
 0x196   : > { %v1745_v12 = vpop.f32.mrf.mxu1 }
 0x197   : > { %v3690_v13 = vadd.f32 %v1745_v12, %v1552_v10  ;;  %v1554_v16 = vpop.f32.mrf.mxu0 }
 0x198   : > { %v1747_v18 = vpop.f32.mrf.mxu1 }
 0x199   : > { %v3692_v19 = vadd.f32 %v1747_v18, %v1554_v16  ;;  %v1556_v20 = vpop.f32.mrf.mxu0 }
 0x19a   : > { %v1749_v24 = vpop.f32.mrf.mxu1 }
 0x19b   : > { %v3694_v25 = vadd.f32 %v1749_v24, %v1556_v20  ;;  %v1560_v26 = vpop.f32.mrf.mxu0 }
 0x19c   : > { %v1753_v30 = vpop.f32.mrf.mxu1 }
 0x19d   : > { %v3696_v31 = vadd.f32 %v1753_v30, %v1560_v26  ;;  %v1562_v32 = vpop.f32.mrf.mxu0 }
 0x19e   : > { %v1755_v34 = vpop.f32.mrf.mxu1 }
 0x19f   : > { %v3698_v35 = vadd.f32 %v1755_v34, %v1562_v32  ;;  %v1564_v37 = vpop.f32.mrf.mxu0 }
 0x1a0   : > { %v1757_v39 = vpop.f32.mrf.mxu1 }
 0x1a1   : > { %v3700_v41 = vadd.f32 %v1757_v39, %v1564_v37  ;;  %v1566_v42 = vpop.f32.mrf.mxu0 }
 0x1a2   : > { %v1759_v44 = vpop.f32.mrf.mxu1 }
 0x1a3   : > { %v3702_v46 = vadd.f32 %v1759_v44, %v1566_v42  ;;  %v1570_v49 = vpop.f32.mrf.mxu0 }
 0x1a4   : > { %v1763_v50 = vpop.f32.mrf.mxu1 }
 0x1a5   : > { %v3704_v55 = vadd.f32 %v1763_v50, %v1570_v49  ;;  %v1572_v56 = vpop.f32.mrf.mxu0 }
 0x1a6   : > { %v1765_v60 = vpop.f32.mrf.mxu1 }
 0x1a7   : > { %v3706_v61 = vadd.f32 %v1765_v60, %v1572_v56  ;;  %v1574_v1 = vpop.f32.mrf.mxu0 }
 0x1a8   : > { %v1767_v2 = vpop.f32.mrf.mxu1 }
 0x1a9   : > { %4091 = vst [vmem:[#allocation13_spill] sm:$0xff] %v3706_v61  ;;  %v3708_v5 = vadd.f32 %v1767_v2, %v1574_v1  ;;  %v1576_v6 = vpop.f32.mrf.mxu0 }
 0x1aa   : > { %v1769_v10 = vpop.f32.mrf.mxu1 }
 0x1ab   : > { %4092 = vst [vmem:[#allocation14_spill] sm:$0xff] %v3708_v5  ;;  %v3710_v12 = vadd.f32 %v1769_v10, %v1576_v6  ;;  %v1580_v16 = vpop.f32.mrf.mxu0 }
 0x1ac   : > { %v1773_v18 = vpop.f32.mrf.mxu1 }
 0x1ad   : > { %4093 = vst [vmem:[#allocation15_spill] sm:$0xff] %v3710_v12  ;;  %v3712_v20 = vadd.f32 %v1773_v18, %v1580_v16  ;;  %v1582_v24 = vpop.f32.mrf.mxu0 }
 0x1ae   : > { %v1775_v26 = vpop.f32.mrf.mxu1 }
 0x1af   : > { %4094 = vst [vmem:[#allocation16_spill] sm:$0xff] %v3712_v20  ;;  %v3714_v30 = vadd.f32 %v1775_v26, %v1582_v24  ;;  %v1584_v32 = vpop.f32.mrf.mxu0 }
 0x1b0   : > { %v1777_v34 = vpop.f32.mrf.mxu1 }
 0x1b1   : > { %4095 = vst [vmem:[#allocation17_spill] sm:$0xff] %v3714_v30  ;;  %v3716_v37 = vadd.f32 %v1777_v34, %v1584_v32  ;;  %v1586_v39 = vpop.f32.mrf.mxu0 }
 0x1b2   : > { %v1779_v42 = vpop.f32.mrf.mxu1 }
 0x1b3   : > { %4096 = vst [vmem:[#allocation18_spill] sm:$0xff] %v3716_v37  ;;  %v3718_v44 = vadd.f32 %v1779_v42, %v1586_v39  ;;  %v1590_v49 = vpop.f32.mrf.mxu0  ;;  %v2208_v37 = vld [vmem:[%s3362_s5] sm:$0xf] }
 0x1b4   : > { %v1783_v50 = vpop.f32.mrf.mxu1 }
 0x1b5   : > { %4097 = vst [vmem:[#allocation19_spill] sm:$0xff] %v3718_v44  ;;  %v3720_v56 = vadd.f32 %v1783_v50, %v1590_v49  ;;  %v1592_v60 = vpop.f32.mrf.mxu0 }
 0x1b6   : > { %v1785_v1 = vpop.f32.mrf.mxu1 }
 0x1b7   : > { %4098 = vst [vmem:[#allocation20_spill] sm:$0xff] %v3720_v56  ;;  %v3722_v2 = vadd.f32 %v1785_v1, %v1592_v60  ;;  %v1594_v6 = vpop.f32.mrf.mxu0 }
 0x1b8   : > { %v1787_v10 = vpop.f32.mrf.mxu1 }
 0x1b9   : > { %4099 = vst [vmem:[#allocation21_spill] sm:$0xff] %v3722_v2  ;;  %v3724_v16 = vadd.f32 %v1787_v10, %v1594_v6  ;;  %v1596_v18 = vpop.f32.mrf.mxu0 }
 0x1ba   : > { %v1789_v24 = vpop.f32.mrf.mxu1 }
 0x1bb   : > { %4100 = vst [vmem:[#allocation22_spill] sm:$0xff] %v3724_v16  ;;  %v3726_v26 = vadd.f32 %v1789_v24, %v1596_v18  ;;  %v1600_v32 = vpop.f32.mrf.mxu0  ;;  %v2210_v24 = vlaneseq }
 0x1bc   : > { %v1793_v34 = vpop.f32.mrf.mxu1 }
 0x1bd   : > { %4101 = vst [vmem:[#allocation23_spill] sm:$0xff] %v3726_v26  ;;  %v3728_v39 = vadd.f32 %v1793_v34, %v1600_v32  ;;  %v1602_v42 = vpop.f32.mrf.mxu0 }
 0x1be   : > { %v1795_v44 = vpop.f32.mrf.mxu1 }
 0x1bf   : > { %4102 = vst [vmem:[#allocation24_spill] sm:$0xff] %v3728_v39  ;;  %v3730_v49 = vadd.f32 %v1795_v44, %v1602_v42  ;;  %v1604_v50 = vpop.f32.mrf.mxu0 }
 0x1c0   : > { %v1797_v56 = vpop.f32.mrf.mxu1 }
 0x1c1   : > { %4103 = vst [vmem:[#allocation25_spill] sm:$0xff] %v3730_v49  ;;  %v3732_v60 = vadd.f32 %v1797_v56, %v1604_v50  ;;  %v1606_v1 = vpop.f32.mrf.mxu0  ;;  %v2211_v56 = vshrl.u32 %v2210_v24, 7 }
 0x1c2   : > { %v1799_v2 = vpop.f32.mrf.mxu1 }
 0x1c3   : > { %4104 = vst [vmem:[#allocation26_spill] sm:$0xff] %v3732_v60  ;;  %v3734_v6 = vadd.f32 %v1799_v2, %v1606_v1  ;;  %v1610_v10 = vpop.f32.mrf.mxu0 }
 0x1c4   : > { %v1803_v16 = vpop.f32.mrf.mxu1 }
 0x1c5   : > { %4105 = vst [vmem:[#allocation27_spill] sm:$0xff] %v3734_v6  ;;  %v3736_v18 = vadd.f32 %v1803_v16, %v1610_v10  ;;  %v1612_v26 = vpop.f32.mrf.mxu0  ;;  %v2212_v16 = vsub.s32 0, %v2211_v56 }
 0x1c6   : > { %v1805_v32 = vpop.f32.mrf.mxu1 }
 0x1c7   : > { %4106 = vst [vmem:[#allocation28_spill] sm:$0xff] %v3736_v18  ;;  %v3738_v34 = vadd.f32 %v1805_v32, %v1612_v26  ;;  %v1614_v44 = vpop.f32.mrf.mxu0  ;;  %v2294_v26 = vsub.s32 1, %v2211_v56  ;;  %v2216_v32 = vsub.s32 2, %v2211_v56 }
 0x1c8   : > { %v1807_v42 = vpop.f32.mrf.mxu1 }
 0x1c9   : > { %4107 = vst [vmem:[#allocation29_spill] sm:$0xff] %v3738_v34  ;;  %v3740_v49 = vadd.f32 %v1807_v42, %v1614_v44  ;;  %v1616_v50 = vpop.f32.mrf.mxu0  ;;  %v2213_v42 = vrot.slane %v2208_v37, %v2212_v16 }
 0x1ca   : > { %v1809_v60 = vpop.f32.mrf.mxu1 }
 0x1cb   : > { %4108 = vst [vmem:[#allocation30_spill] sm:$0xff] %v3740_v49  ;;  %v3742_v39 = vadd.f32 %v1809_v60, %v1616_v50  ;;  %v1620_v2 = vpop.f32.mrf.mxu0  ;;  %v2298_v60 = vsub.s32 3, %v2211_v56 }
 0x1cc   : > { %v1813_v1 = vpop.f32.mrf.mxu1 }
 0x1cd   : > { %4109 = vst [vmem:[#allocation31_spill] sm:$0xff] %v3742_v39  ;;  %v3744_v6 = vadd.f32 %v1813_v1, %v1620_v2  ;;  %v1622_v10 = vpop.f32.mrf.mxu0  ;;  %v2295_v2 = vrot.slane %v2208_v37, %v2294_v26  ;;  %v2217_v1 = vrot.slane %v2208_v37, %v2216_v32 }
 0x1ce   : > { %v1815_v18 = vpop.f32.mrf.mxu1 }
 0x1cf   : > { %4110 = vst [vmem:[#allocation32_spill] sm:$0xff] %v3744_v6  ;;  %v3747_v30 = vadd.f32 %v1815_v18, %v1622_v10  ;;  %v1624_v34 = vpop.f32.mrf.mxu0  ;;  %v3754_v10 = vrot.slane %v2213_v42, %v2212_v16 }
 0x1d0   : > { %v1817_v44 = vpop.f32.mrf.mxu1 }
 0x1d1   : > { %4111 = vst [vmem:[#allocation33_spill] sm:$0xff] %v3747_v30  ;;  %v3749_v24 = vadd.f32 %v1817_v44, %v1624_v34  ;;  %v1626_v50 = vpop.f32.mrf.mxu0  ;;  %v2299_v30 = vrot.slane %v2208_v37, %v2298_v60  ;;  %v3757_v44 = vrot.slane %v2295_v2, %v2294_v26 }
 0x1d2   : > { %v1819_v39 = vpop.f32.mrf.mxu1 }
 0x1d3   : > { %4112 = vst [vmem:[#allocation34_spill] sm:$0xff] %v3749_v24  ;;  %v3751_v49 = vadd.f32 %v1819_v39, %v1626_v50  ;;  %v1856_v6 = vpop.f32.mrf.mxu0  ;;  %v3760_v24 = vrot.slane %v2217_v1, %v2212_v16  ;;  %v3763_v61 = vrot.slane %v2299_v30, %v2294_v26 }
 0x1d4   : > { %v2049_v20 = vpop.f32.mrf.mxu1  ;;  %v1857_v18 = vadd.f32 %v1856_v6, %v3574_v54 }
 0x1d5   : > { %4113 = vst [vmem:[#allocation35_spill] sm:$0xff] %v3751_v49  ;;  %v1858_v12 = vpop.f32.mrf.mxu0 }
 0x1d6   : > { %v2051_v5 = vpop.f32.mrf.mxu1  ;;  %v2050_v34 = vadd.f32 %v2049_v20, %v1857_v18  ;;  %v1859_v56 = vadd.f32 %v1858_v12, %v3582_v63 }
 0x1d7   : > { %v1860_v39 = vpop.f32.mrf.mxu0 }
 0x1d8   : > { %v2053_v50 = vpop.f32.mrf.mxu1  ;;  %v2228_v32 = vmul.f32 %v3754_v10, %v2050_v34  ;;  %v2052_v49 = vadd.f32 %v2051_v5, %v1859_v56  ;;  %v1861_v54 = vadd.f32 %v1860_v39, %v3584_v4 }
 0x1d9   : > { %v1862_v37 = vpop.f32.mrf.mxu0 }
 0x1da   : > { %v2055_v6 = vpop.f32.mrf.mxu1  ;;  %v2310_v42 = vadd.f32 %v3757_v44, %v2228_v32  ;;  %v2229_v20 = vmul.f32 %v3760_v24, %v2052_v49  ;;  %v2054_v60 = vadd.f32 %v2053_v50, %v1861_v54  ;;  %v1863_v63 = vadd.f32 %v1862_v37, %v3586_v9 }
 0x1db   : > { %v1866_v12 = vpop.f32.mrf.mxu0 }
 0x1dc   : > { %v2059_v16 = vpop.f32.mrf.mxu1  ;;  %2374 = vst [vmem:[%s3769_s21] sm:$0xff] %v2310_v42  ;;  %v2311_v5 = vadd.f32 %v3763_v61, %v2229_v20  ;;  %v2230_v4 = vmul.f32 %v3754_v10, %v2054_v60  ;;  %v2056_v30 = vadd.f32 %v2055_v6, %v1863_v63  ;;  %v1867_v26 = vadd.f32 %v1866_v12, %v3590_v14 }
 0x1dd   : > { %v1868_v2 = vpop.f32.mrf.mxu0 }
 0x1de   : > { %v2061_v49 = vpop.f32.mrf.mxu1  ;;  %2375 = vst [vmem:[%s3769_s21 + $0x8] sm:$0xff] %v2311_v5  ;;  %v2312_v9 = vadd.f32 %v3757_v44, %v2230_v4  ;;  %v2231_v1 = vmul.f32 %v3760_v24, %v2056_v30  ;;  %v2060_v18 = vadd.f32 %v2059_v16, %v1867_v26  ;;  %v1869_v34 = vadd.f32 %v1868_v2, %v3598_v23 }
 0x1df   : > { %v1870_v56 = vpop.f32.mrf.mxu0 }
 0x1e0   : > { %v2063_v39 = vpop.f32.mrf.mxu1  ;;  %2376 = vst [vmem:[%s3769_s21 + $0x10] sm:$0xff] %v2312_v9  ;;  %v2313_v50 = vadd.f32 %v3763_v61, %v2231_v1  ;;  %v2232_v32 = vmul.f32 %v3754_v10, %v2060_v18  ;;  %v2062_v14 = vadd.f32 %v2061_v49, %v1869_v34  ;;  %v1871_v54 = vadd.f32 %v1870_v56, %v3600_v28 }
 0x1e1   : > { %v1872_v37 = vpop.f32.mrf.mxu0 }
 0x1e2   : > { %v2065_v6 = vpop.f32.mrf.mxu1  ;;  %2377 = vst [vmem:[%s3769_s21 + $0x18] sm:$0xff] %v2313_v50  ;;  %v2314_v42 = vadd.f32 %v3757_v44, %v2232_v32  ;;  %v2233_v20 = vmul.f32 %v3760_v24, %v2062_v14  ;;  %v2064_v23 = vadd.f32 %v2063_v39, %v1871_v54  ;;  %v1873_v60 = vadd.f32 %v1872_v37, %v3602_v33 }
 0x1e3   : > { %v1876_v63 = vpop.f32.mrf.mxu0 }
 0x1e4   : > { %v2069_v12 = vpop.f32.mrf.mxu1  ;;  %2378 = vst [vmem:[%s3769_s21 + $0x20] sm:$0xff] %v2314_v42  ;;  %v2315_v16 = vadd.f32 %v3763_v61, %v2233_v20  ;;  %v2234_v5 = vmul.f32 %v3754_v10, %v2064_v23  ;;  %v2066_v28 = vadd.f32 %v2065_v6, %v1873_v60  ;;  %v1877_v4 = vadd.f32 %v1876_v63, %v3606_v38 }
 0x1e5   : > { %v1878_v30 = vpop.f32.mrf.mxu0 }
 0x1e6   : > { %v2071_v26 = vpop.f32.mrf.mxu1  ;;  %2379 = vst [vmem:[%s3769_s21 + $0x28] sm:$0xff] %v2315_v16  ;;  %v2316_v2 = vadd.f32 %v3757_v44, %v2234_v5  ;;  %v2235_v49 = vmul.f32 %v3760_v24, %v2066_v28  ;;  %v2070_v33 = vadd.f32 %v2069_v12, %v1877_v4  ;;  %v1879_v9 = vadd.f32 %v1878_v30, %v3614_v47 }
 0x1e7   : > { %v1880_v1 = vpop.f32.mrf.mxu0 }
 0x1e8   : > { %v2073_v18 = vpop.f32.mrf.mxu1  ;;  %2380 = vst [vmem:[%s3769_s21 + $0x30] sm:$0xff] %v2316_v2  ;;  %v2317_v34 = vadd.f32 %v3763_v61, %v2235_v49  ;;  %v2236_v56 = vmul.f32 %v3754_v10, %v2070_v33  ;;  %v2072_v38 = vadd.f32 %v2071_v26, %v1879_v9  ;;  %v1881_v39 = vadd.f32 %v1880_v1, %v3616_v52 }
 0x1e9   : > { %v1882_v50 = vpop.f32.mrf.mxu0 }
 0x1ea   : > { %v2075_v32 = vpop.f32.mrf.mxu1  ;;  %2381 = vst [vmem:[%s3769_s21 + $0x38] sm:$0xff] %v2317_v34  ;;  %v2318_v14 = vadd.f32 %v3757_v44, %v2236_v56  ;;  %v2237_v54 = vmul.f32 %v3760_v24, %v2072_v38  ;;  %v2074_v47 = vadd.f32 %v2073_v18, %v1881_v39  ;;  %v1883_v37 = vadd.f32 %v1882_v50, %v3618_v58 }
 0x1eb   : > { %v1886_v6 = vpop.f32.mrf.mxu0 }
 0x1ec   : > { %v2079_v42 = vpop.f32.mrf.mxu1  ;;  %2382 = vst [vmem:[%s3769_s21 + $0x40] sm:$0xff] %v2318_v14  ;;  %v2319_v20 = vadd.f32 %v3763_v61, %v2237_v54  ;;  %v2238_v23 = vmul.f32 %v3754_v10, %v2074_v47  ;;  %v2076_v52 = vadd.f32 %v2075_v32, %v1883_v37  ;;  %v1887_v60 = vadd.f32 %v1886_v6, %v3622_v0 }
 0x1ed   : > { %v1888_v63 = vpop.f32.mrf.mxu0 }
 0x1ee   : > { %v2081_v12 = vpop.f32.mrf.mxu1  ;;  %2383 = vst [vmem:[%s3769_s21 + $0x48] sm:$0xff] %v2319_v20  ;;  %v2320_v16 = vadd.f32 %v3757_v44, %v2238_v23  ;;  %v2239_v5 = vmul.f32 %v3760_v24, %v2076_v52  ;;  %v2080_v58 = vadd.f32 %v2079_v42, %v1887_v60  ;;  %v1889_v28 = vadd.f32 %v1888_v63, %v3630_v11 }
 0x1ef   : > { %v1890_v4 = vpop.f32.mrf.mxu0 }
 0x1f0   : > { %v2083_v30 = vpop.f32.mrf.mxu1  ;;  %2384 = vst [vmem:[%s3769_s21 + $0x50] sm:$0xff] %v2320_v16  ;;  %v2321_v26 = vadd.f32 %v3763_v61, %v2239_v5  ;;  %v2240_v2 = vmul.f32 %v3754_v10, %v2080_v58  ;;  %v2082_v0 = vadd.f32 %v2081_v12, %v1889_v28  ;;  %v1891_v49 = vadd.f32 %v1890_v4, %v3632_v17 }
 0x1f1   : > { %v1892_v33 = vpop.f32.mrf.mxu0 }
 0x1f2   : > { %v2085_v9 = vpop.f32.mrf.mxu1  ;;  %2385 = vst [vmem:[%s3769_s21 + $0x58] sm:$0xff] %v2321_v26  ;;  %v2322_v1 = vadd.f32 %v3757_v44, %v2240_v2  ;;  %v2241_v18 = vmul.f32 %v3760_v24, %v2082_v0  ;;  %v2084_v11 = vadd.f32 %v2083_v30, %v1891_v49  ;;  %v1893_v34 = vadd.f32 %v1892_v33, %v3634_v22 }
 0x1f3   : > { %v1896_v56 = vpop.f32.mrf.mxu0 }
 0x1f4   : > { %v2089_v38 = vpop.f32.mrf.mxu1  ;;  %2386 = vst [vmem:[%s3769_s21 + $0x60] sm:$0xff] %v2322_v1  ;;  %v2323_v39 = vadd.f32 %v3763_v61, %v2241_v18  ;;  %v2242_v50 = vmul.f32 %v3754_v10, %v2084_v11  ;;  %v2086_v17 = vadd.f32 %v2085_v9, %v1893_v34  ;;  %v1897_v32 = vadd.f32 %v1896_v56, %v3638_v29 }
 0x1f5   : > { %v1898_v14 = vpop.f32.mrf.mxu0 }
 0x1f6   : > { %v2091_v54 = vpop.f32.mrf.mxu1  ;;  %2387 = vst [vmem:[%s3769_s21 + $0x68] sm:$0xff] %v2323_v39  ;;  %v2324_v47 = vadd.f32 %v3757_v44, %v2242_v50  ;;  %v2243_v37 = vmul.f32 %v3760_v24, %v2086_v17  ;;  %v2090_v22 = vadd.f32 %v2089_v38, %v1897_v32  ;;  %v1899_v6 = vadd.f32 %v1898_v14, %v3646_v40 }
 0x1f7   : > { %v1900_v42 = vpop.f32.mrf.mxu0 }
 0x1f8   : > { %v2093_v20 = vpop.f32.mrf.mxu1  ;;  %2388 = vst [vmem:[%s3769_s21 + $0x70] sm:$0xff] %v2324_v47  ;;  %v2325_v23 = vadd.f32 %v3763_v61, %v2243_v37  ;;  %v2244_v52 = vmul.f32 %v3754_v10, %v2090_v22  ;;  %v2092_v29 = vadd.f32 %v2091_v54, %v1899_v6  ;;  %v1901_v60 = vadd.f32 %v1900_v42, %v3648_v45 }
 0x1f9   : > { %v1902_v63 = vpop.f32.mrf.mxu0 }
 0x1fa   : > { %v2095_v12 = vpop.f32.mrf.mxu1  ;;  %2389 = vst [vmem:[%s3769_s21 + $0x78] sm:$0xff] %v2325_v23  ;;  %v2326_v16 = vadd.f32 %v3757_v44, %v2244_v52  ;;  %v2245_v5 = vmul.f32 %v3760_v24, %v2092_v29  ;;  %v2094_v40 = vadd.f32 %v2093_v20, %v1901_v60  ;;  %v1903_v58 = vadd.f32 %v1902_v63, %v3650_v51 }
 0x1fb   : > { %v1906_v28 = vpop.f32.mrf.mxu0 }
 0x1fc   : > { %v2099_v4 = vpop.f32.mrf.mxu1  ;;  %2390 = vst [vmem:[%s3769_s21 + $0x80] sm:$0xff] %v2326_v16  ;;  %v2327_v30 = vadd.f32 %v3763_v61, %v2245_v5  ;;  %v2246_v26 = vmul.f32 %v3754_v10, %v2094_v40  ;;  %v2096_v45 = vadd.f32 %v2095_v12, %v1903_v58  ;;  %v1907_v2 = vadd.f32 %v1906_v28, %v3654_v59 }
 0x1fd   : > { %v1908_v0 = vpop.f32.mrf.mxu0 }
 0x1fe   : > { %v2101_v49 = vpop.f32.mrf.mxu1  ;;  %2391 = vst [vmem:[%s3769_s21 + $0x88] sm:$0xff] %v2327_v30  ;;  %v2328_v33 = vadd.f32 %v3757_v44, %v2246_v26  ;;  %v2247_v9 = vmul.f32 %v3760_v24, %v2096_v45  ;;  %v2100_v51 = vadd.f32 %v2099_v4, %v1907_v2  ;;  %v1909_v1 = vadd.f32 %v1908_v0, %v3662_v7 }
 0x1ff   : > { %v1910_v18 = vpop.f32.mrf.mxu0 }
 0x200   : > { %v2103_v11 = vpop.f32.mrf.mxu1  ;;  %2392 = vst [vmem:[%s3769_s21 + $0x90] sm:$0xff] %v2328_v33  ;;  %v2329_v34 = vadd.f32 %v3763_v61, %v2247_v9  ;;  %v2248_v56 = vmul.f32 %v3754_v10, %v2100_v51  ;;  %v2102_v59 = vadd.f32 %v2101_v49, %v1909_v1  ;;  %v1911_v38 = vadd.f32 %v1910_v18, %v3664_v15 }
 0x201   : > { %v1912_v39 = vpop.f32.mrf.mxu0 }
 0x202   : > { %v2105_v50 = vpop.f32.mrf.mxu1  ;;  %2393 = vst [vmem:[%s3769_s21 + $0x98] sm:$0xff] %v2329_v34  ;;  %v2330_v17 = vadd.f32 %v3757_v44, %v2248_v56  ;;  %v2249_v32 = vmul.f32 %v3760_v24, %v2102_v59  ;;  %v2104_v7 = vadd.f32 %v2103_v11, %v1911_v38  ;;  %v1913_v14 = vadd.f32 %v1912_v39, %v3666_v21 }
 0x203   : > { %v1916_v54 = vpop.f32.mrf.mxu0 }
 0x204   : > { %v2109_v47 = vpop.f32.mrf.mxu1  ;;  %2394 = vst [vmem:[%s3769_s21 + $0xa0] sm:$0xff] %v2330_v17  ;;  %v2331_v37 = vadd.f32 %v3763_v61, %v2249_v32  ;;  %v2250_v22 = vmul.f32 %v3754_v10, %v2104_v7  ;;  %v2106_v15 = vadd.f32 %v2105_v50, %v1913_v14  ;;  %v1917_v6 = vadd.f32 %v1916_v54, %v3669_v27 }
 0x205   : > { %v1918_v42 = vpop.f32.mrf.mxu0 }
 0x206   : > { %v2111_v20 = vpop.f32.mrf.mxu1  ;;  %2395 = vst [vmem:[%s3769_s21 + $0xa8] sm:$0xff] %v2331_v37  ;;  %v2332_v23 = vadd.f32 %v3757_v44, %v2250_v22  ;;  %v2251_v52 = vmul.f32 %v3760_v24, %v2106_v15  ;;  %v2110_v21 = vadd.f32 %v2109_v47, %v1917_v6  ;;  %v1919_v29 = vadd.f32 %v1918_v42, %v3674_v36 }
 0x207   : > { %v1920_v60 = vpop.f32.mrf.mxu0 }
 0x208   : > { %v2113_v63 = vpop.f32.mrf.mxu1  ;;  %2396 = vst [vmem:[%s3769_s21 + $0xb0] sm:$0xff] %v2332_v23  ;;  %v2333_v12 = vadd.f32 %v3763_v61, %v2251_v52  ;;  %v2252_v16 = vmul.f32 %v3754_v10, %v2110_v21  ;;  %v2112_v27 = vadd.f32 %v2111_v20, %v1919_v29  ;;  %v1921_v5 = vadd.f32 %v1920_v60, %v3676_v43 }
 0x209   : > { %v1922_v40 = vpop.f32.mrf.mxu0 }
 0x20a   : > { %v2115_v58 = vpop.f32.mrf.mxu1  ;;  %2397 = vst [vmem:[%s3769_s21 + $0xb8] sm:$0xff] %v2333_v12  ;;  %v2334_v28 = vadd.f32 %v3757_v44, %v2252_v16  ;;  %v2253_v4 = vmul.f32 %v3760_v24, %v2112_v27  ;;  %v2114_v36 = vadd.f32 %v2113_v63, %v1921_v5  ;;  %v1923_v30 = vadd.f32 %v1922_v40, %v3678_v48 }
 0x20b   : > { %v1926_v26 = vpop.f32.mrf.mxu0 }
 0x20c   : > { %v2119_v45 = vpop.f32.mrf.mxu1  ;;  %2398 = vst [vmem:[%s3769_s21 + $0xc0] sm:$0xff] %v2334_v28  ;;  %v2335_v2 = vadd.f32 %v3763_v61, %v2253_v4  ;;  %v2254_v0 = vmul.f32 %v3754_v10, %v2114_v36  ;;  %v2116_v43 = vadd.f32 %v2115_v58, %v1923_v30  ;;  %v1927_v49 = vadd.f32 %v1926_v26, %v3680_v53 }
 0x20d   : > { %v1928_v33 = vpop.f32.mrf.mxu0 }
 0x20e   : > { %v2121_v9 = vpop.f32.mrf.mxu1  ;;  %2399 = vst [vmem:[%s3769_s21 + $0xc8] sm:$0xff] %v2335_v2  ;;  %v2336_v51 = vadd.f32 %v3757_v44, %v2254_v0  ;;  %v2255_v1 = vmul.f32 %v3760_v24, %v2116_v43  ;;  %v2120_v48 = vadd.f32 %v2119_v45, %v1927_v49  ;;  %v1929_v18 = vadd.f32 %v1928_v33, %v3682_v57 }
 0x20f   : > { %v1930_v11 = vpop.f32.mrf.mxu0 }
 0x210   : > { %v2123_v34 = vpop.f32.mrf.mxu1  ;;  %2400 = vst [vmem:[%s3769_s21 + $0xd0] sm:$0xff] %v2336_v51  ;;  %v2337_v56 = vadd.f32 %v3763_v61, %v2255_v1  ;;  %v2256_v59 = vmul.f32 %v3754_v10, %v2120_v48  ;;  %v2122_v53 = vadd.f32 %v2121_v9, %v1929_v18  ;;  %v1931_v38 = vadd.f32 %v1930_v11, %v3684_v62 }
 0x211   : > { %v1932_v39 = vpop.f32.mrf.mxu0 }
 0x212   : > { %v2125_v50 = vpop.f32.mrf.mxu1  ;;  %2401 = vst [vmem:[%s3769_s21 + $0xd8] sm:$0xff] %v2337_v56  ;;  %v2338_v17 = vadd.f32 %v3757_v44, %v2256_v59  ;;  %v2257_v32 = vmul.f32 %v3760_v24, %v2122_v53  ;;  %v2124_v57 = vadd.f32 %v2123_v34, %v1931_v38  ;;  %v1933_v7 = vadd.f32 %v1932_v39, %v3686_v3 }
 0x213   : > { %v1936_v14 = vpop.f32.mrf.mxu0 }
 0x214   : > { %v2129_v54 = vpop.f32.mrf.mxu1  ;;  %2402 = vst [vmem:[%s3769_s21 + $0xe0] sm:$0xff] %v2338_v17  ;;  %v2339_v47 = vadd.f32 %v3763_v61, %v2257_v32  ;;  %v2258_v37 = vmul.f32 %v3754_v10, %v2124_v57  ;;  %v2126_v62 = vadd.f32 %v2125_v50, %v1933_v7  ;;  %v1937_v22 = vadd.f32 %v1936_v14, %v3688_v8  ;;  %v4114_v14 = vld [vmem:[#allocation13_spill] sm:$0xff] }
 0x215   : > { %v1938_v15 = vpop.f32.mrf.mxu0 }
 0x216   : > { %v2131_v6 = vpop.f32.mrf.mxu1  ;;  %2403 = vst [vmem:[%s3769_s21 + $0xe8] sm:$0xff] %v2339_v47  ;;  %v2340_v42 = vadd.f32 %v3757_v44, %v2258_v37  ;;  %v2259_v20 = vmul.f32 %v3760_v24, %v2126_v62  ;;  %v2130_v3 = vadd.f32 %v2129_v54, %v1937_v22  ;;  %v1939_v23 = vadd.f32 %v1938_v15, %v3690_v13  ;;  %v4115_v15 = vld [vmem:[#allocation14_spill] sm:$0xff] }
 0x217   : > { %v1940_v52 = vpop.f32.mrf.mxu0 }
 0x218   : > { %v2133_v21 = vpop.f32.mrf.mxu1  ;;  %2404 = vst [vmem:[%s3769_s21 + $0xf0] sm:$0xff] %v2340_v42  ;;  %v2341_v29 = vadd.f32 %v3763_v61, %v2259_v20  ;;  %v2260_v60 = vmul.f32 %v3754_v10, %v2130_v3  ;;  %v2132_v8 = vadd.f32 %v2131_v6, %v1939_v23  ;;  %v1941_v63 = vadd.f32 %v1940_v52, %v3692_v19 }
 0x219   : > { %v1942_v12 = vpop.f32.mrf.mxu0 }
 0x21a   : > { %v2135_v16 = vpop.f32.mrf.mxu1  ;;  %2405 = vst [vmem:[%s3769_s21 + $0xf8] sm:$0xff] %v2341_v29  ;;  %v2342_v27 = vadd.f32 %v3757_v44, %v2260_v60  ;;  %v2261_v5 = vmul.f32 %v3760_v24, %v2132_v8  ;;  %v2134_v13 = vadd.f32 %v2133_v21, %v1941_v63  ;;  %v1943_v40 = vadd.f32 %v1942_v12, %v3694_v25  ;;  %v4116_v21 = vld [vmem:[#allocation15_spill] sm:$0xff] }
 0x21b   : > { %v1946_v58 = vpop.f32.mrf.mxu0 }
 0x21c   : > { %v2139_v28 = vpop.f32.mrf.mxu1  ;;  %2406 = vst [vmem:[%s3769_s21 + $0x100] sm:$0xff] %v2342_v27  ;;  %v2343_v4 = vadd.f32 %v3763_v61, %v2261_v5  ;;  %v2262_v36 = vmul.f32 %v3754_v10, %v2134_v13  ;;  %v2136_v19 = vadd.f32 %v2135_v16, %v1943_v40  ;;  %v1947_v30 = vadd.f32 %v1946_v58, %v3696_v31  ;;  %v4117_v27 = vld [vmem:[#allocation16_spill] sm:$0xff] }
 0x21d   : > { %v1948_v26 = vpop.f32.mrf.mxu0 }
 0x21e   : > { %v2141_v45 = vpop.f32.mrf.mxu1  ;;  %2407 = vst [vmem:[%s3769_s21 + $0x108] sm:$0xff] %v2343_v4  ;;  %v2344_v2 = vadd.f32 %v3757_v44, %v2262_v36  ;;  %v2263_v0 = vmul.f32 %v3760_v24, %v2136_v19  ;;  %v2140_v25 = vadd.f32 %v2139_v28, %v1947_v30  ;;  %v1949_v43 = vadd.f32 %v1948_v26, %v3698_v35  ;;  %v4118_v36 = vld [vmem:[#allocation17_spill] sm:$0xff] }
 0x21f   : > { %v1950_v49 = vpop.f32.mrf.mxu0 }
 0x220   : > { %v2143_v33 = vpop.f32.mrf.mxu1  ;;  %2408 = vst [vmem:[%s3769_s21 + $0x110] sm:$0xff] %v2344_v2  ;;  %v2345_v9 = vadd.f32 %v3763_v61, %v2263_v0  ;;  %v2264_v51 = vmul.f32 %v3754_v10, %v2140_v25  ;;  %v2142_v31 = vadd.f32 %v2141_v45, %v1949_v43  ;;  %v1951_v1 = vadd.f32 %v1950_v49, %v3700_v41  ;;  %v4119_v25 = vld [vmem:[#allocation18_spill] sm:$0xff] }
 0x221   : > { %v1952_v48 = vpop.f32.mrf.mxu0 }
 0x222   : > { %v2145_v18 = vpop.f32.mrf.mxu1  ;;  %2409 = vst [vmem:[%s3769_s21 + $0x118] sm:$0xff] %v2345_v9  ;;  %v2346_v11 = vadd.f32 %v3757_v44, %v2264_v51  ;;  %v2265_v34 = vmul.f32 %v3760_v24, %v2142_v31  ;;  %v2144_v35 = vadd.f32 %v2143_v33, %v1951_v1  ;;  %v1953_v56 = vadd.f32 %v1952_v48, %v3702_v46  ;;  %v4120_v1 = vld [vmem:[#allocation19_spill] sm:$0xff] }
 0x223   : > { %v1956_v59 = vpop.f32.mrf.mxu0 }
 0x224   : > { %v2149_v53 = vpop.f32.mrf.mxu1  ;;  %2410 = vst [vmem:[%s3769_s21 + $0x120] sm:$0xff] %v2346_v11  ;;  %v2347_v38 = vadd.f32 %v3763_v61, %v2265_v34  ;;  %v2266_v39 = vmul.f32 %v3754_v10, %v2144_v35  ;;  %v2146_v41 = vadd.f32 %v2145_v18, %v1953_v56  ;;  %v1957_v50 = vadd.f32 %v1956_v59, %v3704_v55  ;;  %v4121_v59 = vld [vmem:[#allocation20_spill] sm:$0xff] }
 0x225   : > { %v1958_v17 = vpop.f32.mrf.mxu0 }
 0x226   : > { %v2151_v32 = vpop.f32.mrf.mxu1  ;;  %2411 = vst [vmem:[%s3769_s21 + $0x128] sm:$0xff] %v2347_v38  ;;  %v2348_v57 = vadd.f32 %v3757_v44, %v2266_v39  ;;  %v2267_v7 = vmul.f32 %v3760_v24, %v2146_v41  ;;  %v2150_v46 = vadd.f32 %v2149_v53, %v1957_v50  ;;  %v1959_v54 = vadd.f32 %v1958_v17, %v4114_v14 }
 0x227   : > { %v1960_v47 = vpop.f32.mrf.mxu0 }
 0x228   : > { %v2153_v37 = vpop.f32.mrf.mxu1  ;;  %2412 = vst [vmem:[%s3769_s21 + $0x130] sm:$0xff] %v2348_v57  ;;  %v2349_v62 = vadd.f32 %v3763_v61, %v2267_v7  ;;  %v2268_v22 = vmul.f32 %v3754_v10, %v2150_v46  ;;  %v2152_v55 = vadd.f32 %v2151_v32, %v1959_v54  ;;  %v1961_v6 = vadd.f32 %v1960_v47, %v4115_v15  ;;  %v4122_v32 = vld [vmem:[#allocation21_spill] sm:$0xff] }
 0x229   : > { %v1962_v42 = vpop.f32.mrf.mxu0 }
 0x22a   : > { %v2155_v20 = vpop.f32.mrf.mxu1  ;;  %2413 = vst [vmem:[%s3769_s21 + $0x138] sm:$0xff] %v2349_v62  ;;  %v2350_v3 = vadd.f32 %v3757_v44, %v2268_v22  ;;  %v2269_v23 = vmul.f32 %v3760_v24, %v2152_v55  ;;  %v2154_v52 = vadd.f32 %v2153_v37, %v1961_v6  ;;  %v1963_v29 = vadd.f32 %v1962_v42, %v4116_v21  ;;  %v4123_v37 = vld [vmem:[#allocation22_spill] sm:$0xff] }
 0x22b   : > { %v1966_v60 = vpop.f32.mrf.mxu0 }
 0x22c   : > { %v2159_v8 = vpop.f32.mrf.mxu1  ;;  %2414 = vst [vmem:[%s3769_s21 + $0x140] sm:$0xff] %v2350_v3  ;;  %v2351_v63 = vadd.f32 %v3763_v61, %v2269_v23  ;;  %v2270_v12 = vmul.f32 %v3754_v10, %v2154_v52  ;;  %v2156_v16 = vadd.f32 %v2155_v20, %v1963_v29  ;;  %v1967_v5 = vadd.f32 %v1966_v60, %v4117_v27  ;;  %v4124_v20 = vld [vmem:[#allocation23_spill] sm:$0xff] }
 0x22d   : > { %v1968_v13 = vpop.f32.mrf.mxu0 }
 0x22e   : > { %v2161_v40 = vpop.f32.mrf.mxu1  ;;  %2415 = vst [vmem:[%s3769_s21 + $0x148] sm:$0xff] %v2351_v63  ;;  %v2352_v58 = vadd.f32 %v3757_v44, %v2270_v12  ;;  %v2271_v28 = vmul.f32 %v3760_v24, %v2156_v16  ;;  %v2160_v4 = vadd.f32 %v2159_v8, %v1967_v5  ;;  %v1969_v19 = vadd.f32 %v1968_v13, %v4118_v36  ;;  %v4125_v8 = vld [vmem:[#allocation24_spill] sm:$0xff] }
 0x22f   : > { %v1970_v30 = vpop.f32.mrf.mxu0 }
 0x230   : > { %v2163_v26 = vpop.f32.mrf.mxu1  ;;  %2416 = vst [vmem:[%s3769_s21 + $0x150] sm:$0xff] %v2352_v58  ;;  %v2353_v45 = vadd.f32 %v3763_v61, %v2271_v28  ;;  %v2272_v2 = vmul.f32 %v3754_v10, %v2160_v4  ;;  %v2162_v0 = vadd.f32 %v2161_v40, %v1969_v19  ;;  %v1971_v43 = vadd.f32 %v1970_v30, %v4119_v25  ;;  %v4126_v40 = vld [vmem:[#allocation25_spill] sm:$0xff] }
 0x231   : > { %v1972_v49 = vpop.f32.mrf.mxu0 }
 0x232   : > { %v2165_v33 = vpop.f32.mrf.mxu1  ;;  %2417 = vst [vmem:[%s3769_s21 + $0x158] sm:$0xff] %v2353_v45  ;;  %v2354_v9 = vadd.f32 %v3757_v44, %v2272_v2  ;;  %v2273_v51 = vmul.f32 %v3760_v24, %v2162_v0  ;;  %v2164_v31 = vadd.f32 %v2163_v26, %v1971_v43  ;;  %v1973_v48 = vadd.f32 %v1972_v49, %v4120_v1  ;;  %v4127_v26 = vld [vmem:[#allocation26_spill] sm:$0xff] }
 0x233   : > { %v1976_v18 = vpop.f32.mrf.mxu0 }
 0x234   : > { %v2169_v11 = vpop.f32.mrf.mxu1  ;;  %2418 = vst [vmem:[%s3769_s21 + $0x160] sm:$0xff] %v2354_v9  ;;  %v2355_v34 = vadd.f32 %v3763_v61, %v2273_v51  ;;  %v2274_v35 = vmul.f32 %v3754_v10, %v2164_v31  ;;  %v2166_v56 = vadd.f32 %v2165_v33, %v1973_v48  ;;  %v1977_v53 = vadd.f32 %v1976_v18, %v4121_v59  ;;  %v4128_v33 = vld [vmem:[#allocation27_spill] sm:$0xff] }
 0x235   : > { %v1978_v38 = vpop.f32.mrf.mxu0 }
 0x236   : > { %v2171_v39 = vpop.f32.mrf.mxu1  ;;  %2419 = vst [vmem:[%s3769_s21 + $0x168] sm:$0xff] %v2355_v34  ;;  %v2356_v41 = vadd.f32 %v3757_v44, %v2274_v35  ;;  %v2275_v50 = vmul.f32 %v3760_v24, %v2166_v56  ;;  %v2170_v17 = vadd.f32 %v2169_v11, %v1977_v53  ;;  %v1979_v57 = vadd.f32 %v1978_v38, %v4122_v32  ;;  %v4129_v11 = vld [vmem:[#allocation28_spill] sm:$0xff] }
 0x237   : > { %v1980_v7 = vpop.f32.mrf.mxu0 }
 0x238   : > { %v2173_v46 = vpop.f32.mrf.mxu1  ;;  %2420 = vst [vmem:[%s3769_s21 + $0x170] sm:$0xff] %v2356_v41  ;;  %v2357_v14 = vadd.f32 %v3763_v61, %v2275_v50  ;;  %v2276_v54 = vmul.f32 %v3754_v10, %v2170_v17  ;;  %v2172_v47 = vadd.f32 %v2171_v39, %v1979_v57  ;;  %v1981_v62 = vadd.f32 %v1980_v7, %v4123_v37  ;;  %v4130_v39 = vld [vmem:[#allocation29_spill] sm:$0xff] }
 0x239   : > { %v1982_v22 = vpop.f32.mrf.mxu0 }
 0x23a   : > { %v2175_v55 = vpop.f32.mrf.mxu1  ;;  %2421 = vst [vmem:[%s3769_s21 + $0x178] sm:$0xff] %v2357_v14  ;;  %v2358_v15 = vadd.f32 %v3757_v44, %v2276_v54  ;;  %v2277_v6 = vmul.f32 %v3760_v24, %v2172_v47  ;;  %v2174_v42 = vadd.f32 %v2173_v46, %v1981_v62  ;;  %v1983_v3 = vadd.f32 %v1982_v22, %v4124_v20  ;;  %v4131_v46 = vld [vmem:[#allocation30_spill] sm:$0xff] }
 0x23b   : > { %v1986_v23 = vpop.f32.mrf.mxu0 }
 0x23c   : > { %v2179_v52 = vpop.f32.mrf.mxu1  ;;  %2422 = vst [vmem:[%s3769_s21 + $0x180] sm:$0xff] %v2358_v15  ;;  %v2359_v21 = vadd.f32 %v3763_v61, %v2277_v6  ;;  %v2278_v29 = vmul.f32 %v3754_v10, %v2174_v42  ;;  %v2176_v60 = vadd.f32 %v2175_v55, %v1983_v3  ;;  %v1987_v63 = vadd.f32 %v1986_v23, %v4125_v8  ;;  %v4132_v55 = vld [vmem:[#allocation31_spill] sm:$0xff] }
 0x23d   : > { %v1988_v12 = vpop.f32.mrf.mxu0 }
 0x23e   : > { %v2181_v16 = vpop.f32.mrf.mxu1  ;;  %2423 = vst [vmem:[%s3769_s21 + $0x188] sm:$0xff] %v2359_v21  ;;  %v2360_v27 = vadd.f32 %v3757_v44, %v2278_v29  ;;  %v2279_v5 = vmul.f32 %v3760_v24, %v2176_v60  ;;  %v2180_v13 = vadd.f32 %v2179_v52, %v1987_v63  ;;  %v1989_v58 = vadd.f32 %v1988_v12, %v4126_v40  ;;  %v4133_v52 = vld [vmem:[#allocation32_spill] sm:$0xff] }
 0x23f   : > { %v1990_v28 = vpop.f32.mrf.mxu0 }
 0x240   : > { %v2183_v4 = vpop.f32.mrf.mxu1  ;;  %2424 = vst [vmem:[%s3769_s21 + $0x190] sm:$0xff] %v2360_v27  ;;  %v2361_v36 = vadd.f32 %v3763_v61, %v2279_v5  ;;  %v2280_v19 = vmul.f32 %v3754_v10, %v2180_v13  ;;  %v2182_v30 = vadd.f32 %v2181_v16, %v1989_v58  ;;  %v1991_v45 = vadd.f32 %v1990_v28, %v4127_v26  ;;  %v4134_v16 = vld [vmem:[#allocation33_spill] sm:$0xff] }
 0x241   : > { %v1992_v2 = vpop.f32.mrf.mxu0 }
 0x242   : > { %v2185_v0 = vpop.f32.mrf.mxu1  ;;  %2425 = vst [vmem:[%s3769_s21 + $0x198] sm:$0xff] %v2361_v36  ;;  %v2362_v25 = vadd.f32 %v3757_v44, %v2280_v19  ;;  %v2281_v43 = vmul.f32 %v3760_v24, %v2182_v30  ;;  %v2184_v49 = vadd.f32 %v2183_v4, %v1991_v45  ;;  %v1993_v9 = vadd.f32 %v1992_v2, %v4128_v33  ;;  %v4135_v4 = vld [vmem:[#allocation34_spill] sm:$0xff]  ;;  %v4136_v2 = vld [vmem:[#allocation35_spill] sm:$0xff] }
 0x243   : > { %v1996_v51 = vpop.f32.mrf.mxu0 }
 0x244   : > { %v2189_v31 = vpop.f32.mrf.mxu1  ;;  %2426 = vst [vmem:[%s3769_s21 + $0x1a0] sm:$0xff] %v2362_v25  ;;  %v2363_v1 = vadd.f32 %v3763_v61, %v2281_v43  ;;  %v2282_v48 = vmul.f32 %v3754_v10, %v2184_v49  ;;  %v2186_v18 = vadd.f32 %v2185_v0, %v1993_v9  ;;  %v1997_v34 = vadd.f32 %v1996_v51, %v4129_v11 }
 0x245   : > { %v1998_v35 = vpop.f32.mrf.mxu0 }
 0x246   : > { %v2191_v56 = vpop.f32.mrf.mxu1  ;;  %2427 = vst [vmem:[%s3769_s21 + $0x1a8] sm:$0xff] %v2363_v1  ;;  %v2364_v59 = vadd.f32 %v3757_v44, %v2282_v48  ;;  %v2283_v53 = vmul.f32 %v3760_v24, %v2186_v18  ;;  %v2190_v38 = vadd.f32 %v2189_v31, %v1997_v34  ;;  %v1999_v41 = vadd.f32 %v1998_v35, %v4130_v39 }
 0x247   : > { %v2000_v50 = vpop.f32.mrf.mxu0 }
 0x248   : > { %v2193_v17 = vpop.f32.mrf.mxu1  ;;  %2428 = vst [vmem:[%s3769_s21 + $0x1b0] sm:$0xff] %v2364_v59  ;;  %v2365_v32 = vadd.f32 %v3763_v61, %v2283_v53  ;;  %v2284_v57 = vmul.f32 %v3754_v10, %v2190_v38  ;;  %v2192_v7 = vadd.f32 %v2191_v56, %v1999_v41  ;;  %v2001_v14 = vadd.f32 %v2000_v50, %v4131_v46 }
 0x249   : > { %v2002_v54 = vpop.f32.mrf.mxu0 }
 0x24a   : > { %v2195_v47 = vpop.f32.mrf.mxu1  ;;  %2429 = vst [vmem:[%s3769_s21 + $0x1b8] sm:$0xff] %v2365_v32  ;;  %v2366_v37 = vadd.f32 %v3757_v44, %v2284_v57  ;;  %v2285_v62 = vmul.f32 %v3760_v24, %v2192_v7  ;;  %v2194_v22 = vadd.f32 %v2193_v17, %v2001_v14  ;;  %v2003_v15 = vadd.f32 %v2002_v54, %v4132_v55 }
 0x24b   : > { %v2006_v6 = vpop.f32.mrf.mxu0 }
 0x24c   : > { %v2199_v42 = vpop.f32.mrf.mxu1  ;;  %2430 = vst [vmem:[%s3769_s21 + $0x1c0] sm:$0xff] %v2366_v37  ;;  %v2367_v20 = vadd.f32 %v3763_v61, %v2285_v62  ;;  %v2286_v3 = vmul.f32 %v3754_v10, %v2194_v22  ;;  %v2196_v23 = vadd.f32 %v2195_v47, %v2003_v15  ;;  %v2007_v21 = vadd.f32 %v2006_v6, %v4133_v52 }
 0x24d   : > { %v2008_v29 = vpop.f32.mrf.mxu0 }
 0x24e   : > { %v2201_v60 = vpop.f32.mrf.mxu1  ;;  %2431 = vst [vmem:[%s3769_s21 + $0x1c8] sm:$0xff] %v2367_v20  ;;  %v2368_v8 = vadd.f32 %v3757_v44, %v2286_v3  ;;  %v2287_v63 = vmul.f32 %v3760_v24, %v2196_v23  ;;  %v2200_v12 = vadd.f32 %v2199_v42, %v2007_v21  ;;  %v2009_v27 = vadd.f32 %v2008_v29, %v4134_v16 }
 0x24f   : > { %v2010_v5 = vpop.f32.mrf.mxu0 }
 0x250   : > { %v2203_v13 = vpop.f32.mrf.mxu1  ;;  %2432 = vst [vmem:[%s3769_s21 + $0x1d0] sm:$0xff] %v2368_v8  ;;  %v2369_v40 = vadd.f32 %v3763_v61, %v2287_v63  ;;  %v2288_v58 = vmul.f32 %v3754_v10, %v2200_v12  ;;  %v2202_v28 = vadd.f32 %v2201_v60, %v2009_v27  ;;  %v2011_v36 = vadd.f32 %v2010_v5, %v4135_v4 }
 0x251   : > { %v2012_v19 = vpop.f32.mrf.mxu0 }
 0x252   : > { %2433 = vst [vmem:[%s3769_s21 + $0x1d8] sm:$0xff] %v2369_v40  ;;  %v2370_v30 = vadd.f32 %v3757_v44, %v2288_v58  ;;  %v2289_v26 = vmul.f32 %v3760_v24, %v2202_v28  ;;  %v2204_v45 = vadd.f32 %v2203_v13, %v2011_v36  ;;  %v2013_v0 = vadd.f32 %v2012_v19, %v4136_v2  ;;  %v2205_v25 = vpop.f32.mrf.mxu1 }
 0x254   : > { %2434 = vst [vmem:[%s3769_s21 + $0x1e0] sm:$0xff] %v2370_v30  ;;  %v2371_v43 = vadd.f32 %v3763_v61, %v2289_v26  ;;  %v2290_v49 = vmul.f32 %v3754_v10, %v2204_v45  ;;  %v2206_v33 = vadd.f32 %v2205_v25, %v2013_v0 }
 0x256   : > { %2435 = vst [vmem:[%s3769_s21 + $0x1e8] sm:$0xff] %v2371_v43  ;;  %v2372_v9 = vadd.f32 %v3757_v44, %v2290_v49  ;;  %v2291_v51 = vmul.f32 %v3760_v24, %v2206_v33 }
 0x258   : > { %2436 = vst [vmem:[%s3769_s21 + $0x1f0] sm:$0xff] %v2372_v9  ;;  %v2373_v10 = vadd.f32 %v3763_v61, %v2291_v51 }
 0x25a   : > { %2437 = vst [vmem:[%s3769_s21 + $0x1f8] sm:$0xff] %v2373_v10 }
 0x25b   : > { %3107 = shalt.err (!%p3104_p6)
}
 0x25c   : > { %s3108_s22 = scalar_lea.hbm %s4022_s7, 8192  ;;  %s3112_s29 = scalar_lea.hbm %s4078_s3, 16384 }
 0x25d   : > { %p3109_p8 = scmp.ne.s32.totalorder %s4022_s7, %s3108_s22  ;;  %p3113_p10 = scmp.lt.s32.totalorder %s4022_s7, %s4078_s3 }
 0x25e   : > { %p3114_p7 = scmp.lt.s32.totalorder %s3112_s29, %s3108_s22 }
 0x25f   : > { %p3110_p5 = pnand %p3109_p8, %p4137_p13 }
 0x260   : > { %p3115_p12 = por %p3114_p7, %p3113_p10 }
 0x261   : > { %p3111_p9 = pneg %p3110_p5 }
 0x263   : > { %p3116_p11 = pnand %p3115_p12, %p3111_p9 }
 0x265   : > { %3119 = shalt.err (!%p3116_p11)
}
 0x266   : > { %s3192_s21 = smov 256   ;;  %s3193_s26 = smov 16  }
 0x267   : > { %2744 = dma.vmem_to_hbm [thread:$0]  (%p4137_p13), %s4024_s9, 8192, %s4022_s7, %s2439_s15, %s3192_s21, %s3192_s21, %s3193_s26  }
 0x268 PF: > { %s2472_s11 = sand.u32 1, %s3162_s12   ;;  %p4138_p2 = scmp.ne.s32.totalorder %s4085_s25, 0 }
 0x269   : > { %p4139_p1 = scmp.ge.s32.totalorder %s3182_s17, 2  ;;  %s2473_s30 = scalar_lea.sflag [#allocation4], %s2472_s11 }
 0x26b   : > { %p2758_p0 = pnand %p4139_p1, %p4138_p2 }
 0x26d   : > { %p2759_p3 = pneg %p2758_p0 }
 0x26f   : > { %3157 = dma.done.wait (%p2759_p3), %s2473_s30, 8192  }
 0x270   : > { %3159 = vsyncadd (%p2759_p3), %s2473_s30, 4294959104  ;;  %s20_s17 = sadd.s32 1, %s3182_s17   ;;  %s4140_s12 = smov %s3166_s13 }
 0x271   : > { %p17_p4 = scmp.ge.s32.totalorder %s20_s17, 4   ;;  %s4141_s13 = smov %s3170_s14 }
 0x272   : > { %s4142_s14 = smov %s3262_s24  ;;  %s4143_s15 = smov %s3178_s16 }
 0x273   : > { %s4144_s16 = smov %s4146_s18  ;;  %19 = sbr.rel (!%p17_p4) target bundleno = 7 (0x7), region = 93 }
 0x278   :  { %2478 = vsyncpa [#allocation3], 1 }
 0x279   :  { %2480 = vsyncpa [#allocation3 + $0x1], 1 }
 0x27a   :  { %2481 = vsyncpa [#allocation6], 1 }
 0x27b   :  { %2482 = vsyncpa [#allocation4], 1 }
 0x27c   :  { %2484 = vsyncpa [#allocation4 + $0x1], 1 }

</bundles_post_ra>
